<compile_context>
chip_gen: v7x
topology: tpu7x:2x2x1
jax: 0.10.0
libtpu: 0.0.40
codegen_flags: <defaults>
</compile_context>

<pallas_src>
import numpy as np
import jax
import jax.numpy as jnp
from jax.experimental import pallas as pl
from jax.experimental.pallas import tpu as pltpu

PAD_SIZE = 15                     # Conv1d in_channels (PyTorch C axis)
CHAR_DIM = 8                      # Conv1d spatial length (PyTorch W axis)
FILTERS = 32                      # Conv1d out_channels
KERNEL_SIZES = (3, 4, 5)
N_POS = sum(CHAR_DIM - k + 1 for k in KERNEL_SIZES)   # 6 + 5 + 4 = 15 positions
N_POS_PAD = 16                                        # pad to 16 -> 512 output lanes
FEAT = PAD_SIZE * CHAR_DIM                            # 120 flattened features
NOUT = N_POS_PAD * FILTERS                            # 512 fused output lanes
FILT_PAD = 128                                        # lane-dense output width
TM = 512                                              # token tile (rows per grid step)

VOCAB = list("abcdefghijklmnopqrstuvwxyz")
UNK_IDX = 1
STOI = {c: i + 2 for i, c in enumerate(VOCAB)}        # <PAD>=0, <UNK>=1


# ----------------------------- Pallas kernel -------------------------------
def charcnn_kernel(x_ref, w_ref, b_ref, o_ref):
    # x_ref: (TM, 120) bf16    w_ref: (120, 512) bf16
    # b_ref: (1, 512)  f32     o_ref: (TM, 128) f32
    # One fused MXU matmul over all 16 position slabs, f32 accumulation.
    y = jnp.dot(x_ref[...], w_ref[...], preferred_element_type=jnp.float32)
    y = y + b_ref[...]                                 # single per-position bias add

    # Max-pool over the 16 position groups (32 lanes each).
    # Step 1: reduce the four 128-lane quarters with full-vreg maxes.
    m = jnp.maximum(jnp.maximum(y[:, 0:128], y[:, 128:256]),
                    jnp.maximum(y[:, 256:384], y[:, 384:512]))   # (TM, 128)
    # Step 2+3: reduce the four 32-lane groups inside the vreg via XLU rolls.
    # (pltpu.roll needs a non-negative axis: axis=1 is the lane axis here.)
    m = jnp.maximum(m, pltpu.roll(m, shift=64, axis=1))
    m = jnp.maximum(m, pltpu.roll(m, shift=32, axis=1))
    # ReLU after the max (ReLU is monotone -> exactly max_p ReLU(y_p)).
    # Lanes [:, :32] hold the pooled features; store lane-dense 128-wide block.
    o_ref[...] = jnp.maximum(m, 0.0)


def charcnn_pallas(emb_flat_padded, w_big, b_big):
    tp = emb_flat_padded.shape[0]
    return pl.pallas_call(
        charcnn_kernel,
        out_shape=jax.ShapeDtypeStruct((tp, FILT_PAD), jnp.float32),
        grid_spec=pltpu.PrefetchScalarGridSpec(
            num_scalar_prefetch=0,
            grid=(tp // TM,),
            in_specs=[
                pl.BlockSpec((TM, FEAT), lambda i: (i, 0)),
                pl.BlockSpec((FEAT, NOUT), lambda i: (0, 0)),
                pl.BlockSpec((1, NOUT), lambda i: (0, 0)),
            ],
            out_specs=pl.BlockSpec((TM, FILT_PAD), lambda i: (i, 0)),
        ),
        compiler_params=pltpu.CompilerParams(dimension_semantics=("parallel",)),
    )(emb_flat_padded, w_big, b_big)


# ------------------------- parameter construction --------------------------
def init_params(key):
    """Deterministic synthetic init matching the module's parameter shapes."""
    keys = jax.random.split(key, 1 + 2 * len(KERNEL_SIZES))
    vocab_size = len(VOCAB) + 2
    emb_table = jax.random.normal(keys[0], (vocab_size, CHAR_DIM), jnp.float32) * 0.1
    emb_table = emb_table.at[0].set(0.0)              # padding_idx=0 -> zero row
    Ws, bs = [], []
    for i, k in enumerate(KERNEL_SIZES):
        kw, kb = keys[1 + 2 * i], keys[2 + 2 * i]
        bound = 1.0 / np.sqrt(PAD_SIZE * k)
        Ws.append(jax.random.uniform(kw, (FILTERS, PAD_SIZE, k), jnp.float32, -bound, bound))
        bs.append(jax.random.uniform(kb, (FILTERS,), jnp.float32, -bound, bound))
    return emb_table, Ws, bs


def build_big_weights(Ws, bs):
    """Fuse every (conv, output-position) pair lane-wise into one (120, 512) slab.

    Column block [p*32:(p+1)*32] is position p's zero-scattered conv weight.
    Position 15 is an inert pad slab (zero weights, -1e30 bias) so it never
    wins the max.  Weights are bf16 (MXU), bias stays f32 (VPU epilogue).
    """
    w_cols, b_cols = [], []
    for Wk, bk in zip(Ws, bs):                        # Wk: (F, 15, k)
        f, c, k = Wk.shape
        for l in range(CHAR_DIM - k + 1):             # output positions of this conv
            wp = jnp.zeros((c, CHAR_DIM, f), jnp.float32)
            wp = wp.at[:, l:l + k, :].set(jnp.transpose(Wk, (1, 2, 0)))
            w_cols.append(wp.reshape(FEAT, f))
            b_cols.append(bk)
    for _ in range(N_POS_PAD - len(w_cols)):          # inert 16th position
        w_cols.append(jnp.zeros((FEAT, FILTERS), jnp.float32))
        b_cols.append(jnp.full((FILTERS,), -1e30, jnp.float32))
    w_big = jnp.concatenate(w_cols, axis=1)           # (120, 512), position-major lanes
    b_big = jnp.concatenate(b_cols, axis=0)[None, :]  # (1, 512)
    return w_big.astype(jnp.bfloat16), b_big


# ------------------------------ host-side glue ------------------------------
def sent_to_indices(sent):
    """sent_to_tensor / char_pad_and_stack: tokens -> (T, 15) char id matrix."""
    rows = []
    for token in sent:
        ids = [STOI.get(ch, UNK_IDX) for ch in token][:PAD_SIZE]
        ids = ids + [0] * (PAD_SIZE - len(ids))
        rows.append(ids)
    return np.asarray(rows, dtype=np.int32)


def charcnn_forward(sent, emb_table, w_big, b_big):
    # TODO(synk): string tokenization (sent_to_tensor/stoi) has no Pallas
    # equivalent; it runs host-side, matching the PyTorch stoi/pad/stack logic.
    idx = jnp.asarray(sent_to_indices(sent))                  # (T, 15) int32
    t = idx.shape[0]
    emb = jnp.take(emb_table, idx, axis=0)                    # (T, 15, 8) embedding gather (XLA glue)
    emb_flat = emb.reshape(t, FEAT).astype(jnp.bfloat16)      # (T, 120) bf16 MXU input
    tp = ((t + TM - 1) // TM) * TM
    emb_flat = jnp.pad(emb_flat, ((0, tp - t), (0, 0)))       # pad rows with zeros
    out = charcnn_pallas(emb_flat, w_big, b_big)              # (tp, 128) f32
    return out[:t, :FILTERS]                                  # (T, filters)


# ------------------------------ pure-JAX reference ---------------------------
def ref_forward(emb, Ws, bs):
    outs = []
    for Wk, bk in zip(Ws, bs):
        k = Wk.shape[2]
        for l in range(CHAR_DIM - k + 1):
            y = jnp.einsum("tcj,fcj->tf", emb[:, :, l:l + k], Wk) + bk
            outs.append(jnp.maximum(y, 0.0))
    return jnp.max(jnp.stack(outs, axis=-1), axis=-1)


if __name__ == "__main__":
    key = jax.random.PRNGKey(0)
    emb_table, Ws, bs = init_params(key)
    w_big, b_big = build_big_weights(Ws, bs)

    # Deterministic example "document": repeat a small word list so the token
    # count spans multiple TM=512 grid steps (1200 tokens -> grid of 3).
    base = ["the", "quick", "brown", "fox", "jumps", "over", "lazy", "dogs!",
            "pallas", "tpu", "kernel", "character", "embedding", "convolution",
            "a", "zz", "supercalifragilisticexpialidocious"]
    sent = (base * 75)[:1200]

    out = charcnn_forward(sent, emb_table, w_big, b_big)
    out = jax.block_until_ready(out)
    assert out.shape == (len(sent), FILTERS)

    # verify against a pure-JAX (f32) re-implementation of the PyTorch forward;
    # tolerance loosened for the bf16 matmul inputs (f32 accumulation).
    idx = jnp.asarray(sent_to_indices(sent))
    emb = jnp.take(emb_table, idx, axis=0).astype(jnp.float32)
    ref = ref_forward(emb, Ws, bs)
    np.testing.assert_allclose(np.asarray(out), np.asarray(ref), rtol=1e-2, atol=1e-2)

    print("KERNEL_OK")
</pallas_src>

<mosaic_0001>
module attributes {stable_mosaic.version = 11 : i64} {
  func.func @charcnn_kernel(%arg0: i32, %arg1: memref<512x120xbf16, #tpu.memory_space<vmem>>, %arg2: memref<120x512xbf16, #tpu.memory_space<vmem>>, %arg3: memref<1x512xf32, #tpu.memory_space<vmem>>, %arg4: memref<512x128xf32, #tpu.memory_space<vmem>>) attributes {dimension_semantics = [#tpu.dimension_semantics<parallel>], iteration_bounds = array<i64: 3>, scalar_prefetch = 0 : i64, scratch_operands = 0 : i64, tpu.core_type = #tpu.core_type<tc>, window_params = [{transform_indices = @transform_0, window_bounds = array<i64: 512, 120>}, {pipeline_mode = #tpu.pipeline_mode<synchronous>, transform_indices = @transform_1, window_bounds = array<i64: 120, 512>}, {pipeline_mode = #tpu.pipeline_mode<synchronous>, transform_indices = @transform_2, window_bounds = array<i64: 1, 512>}, {transform_indices = @transform_3, window_bounds = array<i64: 512, 128>}]} {
    %c0 = arith.constant 0 : index
    %c0_0 = arith.constant 0 : index
    %0 = vector.load %arg1[%c0, %c0_0] : memref<512x120xbf16, #tpu.memory_space<vmem>>, vector<512x120xbf16>
    %c0_1 = arith.constant 0 : index
    %c0_2 = arith.constant 0 : index
    %1 = vector.load %arg2[%c0_1, %c0_2] : memref<120x512xbf16, #tpu.memory_space<vmem>>, vector<120x512xbf16>
    %cst = arith.constant dense<0.000000e+00> : vector<512x512xf32>
    %2 = tpu.matmul %0, %1, %cst {dimension_numbers = #tpu.dot_dimension_numbers<[1], [0], [0], [1], [0, 0, 1, 1], [], []>} : vector<512x120xbf16>, vector<120x512xbf16>, vector<512x512xf32> -> vector<512x512xf32>
    %c0_3 = arith.constant 0 : index
    %c0_4 = arith.constant 0 : index
    %3 = vector.load %arg3[%c0_3, %c0_4] : memref<1x512xf32, #tpu.memory_space<vmem>>, vector<1x512xf32>
    %4 = vector.broadcast %3 : vector<1x512xf32> to vector<512x512xf32>
    %5 = arith.addf %2, %4 : vector<512x512xf32>
    %6 = vector.extract_strided_slice %5 {offsets = [0, 0], sizes = [512, 128], strides = [1, 1]} : vector<512x512xf32> to vector<512x128xf32>
    %7 = vector.extract_strided_slice %5 {offsets = [0, 128], sizes = [512, 128], strides = [1, 1]} : vector<512x512xf32> to vector<512x128xf32>
    %8 = arith.maximumf %6, %7 : vector<512x128xf32>
    %9 = vector.extract_strided_slice %5 {offsets = [0, 256], sizes = [512, 128], strides = [1, 1]} : vector<512x512xf32> to vector<512x128xf32>
    %10 = vector.extract_strided_slice %5 {offsets = [0, 384], sizes = [512, 128], strides = [1, 1]} : vector<512x512xf32> to vector<512x128xf32>
    %11 = arith.maximumf %9, %10 : vector<512x128xf32>
    %12 = arith.maximumf %8, %11 : vector<512x128xf32>
    %c64_i32 = arith.constant 64 : i32
    %13 = tpu.dynamic_rotate %12 by %c64_i32 dim 1 : vector<512x128xf32>, i32 -> vector<512x128xf32>
    %14 = arith.maximumf %12, %13 : vector<512x128xf32>
    %c32_i32 = arith.constant 32 : i32
    %15 = tpu.dynamic_rotate %14 by %c32_i32 dim 1 : vector<512x128xf32>, i32 -> vector<512x128xf32>
    %16 = arith.maximumf %14, %15 : vector<512x128xf32>
    %cst_5 = arith.constant 0.000000e+00 : f32
    %17 = vector.broadcast %cst_5 : f32 to vector<512x128xf32>
    %18 = arith.maximumf %16, %17 : vector<512x128xf32>
    %c0_6 = arith.constant 0 : index
    %c0_7 = arith.constant 0 : index
    %19 = vector.load %arg4[%c0_6, %c0_7] : memref<512x128xf32, #tpu.memory_space<vmem>>, vector<512x128xf32>
    tpu.vector_store %arg4[%c0_6, %c0_7], %18 {strides = array<i32>} : memref<512x128xf32, #tpu.memory_space<vmem>>, vector<512x128xf32>,
    return
  }
  func.func @transform_0(%arg0: i32) -> (i32, i32) {
    %c0_i32 = arith.constant 0 : i32
    %c0_i32_0 = arith.constant 0 : i32
    return %arg0, %c0_i32 : i32, i32
  }
  func.func @transform_1(%arg0: i32) -> (i32, i32) {
    %c0_i32 = arith.constant 0 : i32
    %c0_i32_0 = arith.constant 0 : i32
    %c0_i32_1 = arith.constant 0 : i32
    return %c0_i32, %c0_i32_0 : i32, i32
  }
  func.func @transform_2(%arg0: i32) -> (i32, i32) {
    %c0_i32 = arith.constant 0 : i32
    %c0_i32_0 = arith.constant 0 : i32
    %c0_i32_1 = arith.constant 0 : i32
    return %c0_i32, %c0_i32_0 : i32, i32
  }
  func.func @transform_3(%arg0: i32) -> (i32, i32) {
    %c0_i32 = arith.constant 0 : i32
    %c0_i32_0 = arith.constant 0 : i32
    return %arg0, %c0_i32 : i32, i32
  }
}

</mosaic_0001>

<bundles_post_ra>
// kernel: tpu_custom_call.1
= control target key start
LH: loop header
LB: loop body
LE: loop exit
PB: predicated region body
PF: predicated region fallthrough
CT: control target
= control target key end

     0   :  { %8 = vsyncpa [#allocation3], 0  ;;  %s3882_s0 = inlined_call_operand.vmem [shape: bf16[1536,120], index: 0, kind: input, shape index: {}]   ;;  %s3883_s1 = inlined_call_operand.vmem [shape: bf16[120,512], index: 1, kind: input, shape index: {}]   ;;  %s3884_s2 = inlined_call_operand.vmem [shape: f32[1,512], index: 2, kind: input, shape index: {}]   ;;  %s3885_s3 = inlined_call_operand.hbm [shape: f32[1536,128], index: 3, kind: output, shape index: {}]  }
   0x1   :  { %10 = vsyncpa [#allocation3 + $0x1], 0  ;;  %s2550_s12 = smov 0   ;;  %s2552_s13 = smov 0  }
   0x2   :  { %s2554_s14 = smov 0   ;;  %s2556_s15 = smov 0  }
   0x3 LB: > { %s2571_s16 = sadd.s32 4294967295, %s2522_s15   ;;  %s2195_s17 = sadd.s32 4294967294, %s2522_s15   ;;  %s2522_s15 = sphi %s2556_s15, %s3945_s15   ;;  %s2518_s14 = sphi %s2554_s14, %s3944_s14   ;;  %s2514_s13 = sphi %s2552_s13, %s3943_s13   ;;  %s2510_s12 = sphi %s2550_s12, %s3942_s12  }
   0x4   : > { %s2575_s18 = sadd.s32 1, %s2522_s15   ;;  %s91_s19 = sadd.s32 1, %s2518_s14 }
   0x5   : > { %s88_s20 = ssub.s32 %s2522_s15, %s2575_s18  ;;  %p101_p0 = scmp.ne.s32.totalorder %s2518_s14, %s2514_s13 }
   0x6   : > { %p89_p1 = scmp.eq.s32.totalorder %s88_s20, 0  ;;  %p102_p2 = scmp.eq.s32.totalorder %s2571_s16, 2 }
   0x7   : > { %p107_p3 = scmp.ne.s32.totalorder %s2514_s13, %s2510_s12  ;;  %p108_p4 = scmp.eq.s32.totalorder %s2195_s17, 2 }
   0x8   : > { %s2586_s21 = scalar_select %p89_p1, %s2518_s14, %s91_s19  }
   0x9   : > { %p2588_p5 = por %p102_p2, %p101_p0  ;;  %p2592_p6 = por %p108_p4, %p107_p3 }
   0xa   : > { %p2198_p7 = scmp.ge.s32.totalorder %s2522_s15, 1  ;;  %p141_p8 = scmp.lt.s32.totalorder %s2522_s15, 4 }
   0xc   : > { %p142_p9 = pnand %p2198_p7, %p141_p8 }
   0xe   : > { %145 = sbr.rel (%p142_p9) target bundleno = 780 (0x30c), region = 32 }
  0x15   : > { %v2382_v0 = vld [vmem:[%s3883_s1 + $0x4] ss:$16 sps:$4 sm:$0xff]   ;;  %v2384_v1 = vld [vmem:[%s3883_s1 + $0xc] ss:$16 sps:$4 sm:$0xff]   ;;  %v2524_v2 = vmov 0   ;;  %s2200_s7 = sshll.u32 %s2571_s16, 6  ;;  %v269_v63 = vlaneseq }
  0x16   : > { %741 = vmatprep.mubr.bf16.mxu0 %v2524_v2  ;;  %1094 = vmatprep.mubr.bf16.mxu1 %v2524_v2  ;;  %v2386_v3 = vld [vmem:[%s3883_s1] ss:$16 sps:$4 sm:$0xff]   ;;  %v2387_v4 = vld [vmem:[%s3883_s1 + $0x8] ss:$16 sps:$4 sm:$0xff]   ;;  %v2388_v5 = vld [vmem:[%s3883_s1 + $0x24] ss:$16 sps:$4 sm:$0xff]  }
  0x17   : > { %709 = vmatprep.subr.bf16.mxu0 %v2382_v0  ;;  %1062 = vmatprep.subr.bf16.mxu1 %v2384_v1  ;;  %v2390_v6 = vld [vmem:[%s3883_s1 + $0x2c] ss:$16 sps:$4 sm:$0xff]   ;;  %v2392_v7 = vld [vmem:[%s3883_s1 + $0x20] ss:$16 sps:$4 sm:$0xff]   ;;  %v2393_v8 = vld [vmem:[%s3883_s1 + $0x28] ss:$16 sps:$4 sm:$0xff]  }
  0x18   : > { %710 = vmatpush1.bf16.msra.mxu0 %v2386_v3  ;;  %1063 = vmatpush1.bf16.msra.mxu1 %v2387_v4  ;;  %v2394_v9 = vld [vmem:[%s3883_s1 + $0x44] ss:$16 sps:$4 sm:$0xff]   ;;  %p166_p10 = scmp.lt.s32.totalorder %s2200_s7, 191  ;;  %v2396_v10 = vld [vmem:[%s3883_s1 + $0x4c] ss:$16 sps:$4 sm:$0xff]   ;;  %vm696_vm0 = vcmask 1043456  }
  0x19   : > { %711 = vmatprep.subr.bf16.mxu0 %v2388_v5  ;;  %1064 = vmatprep.subr.bf16.mxu1 %v2390_v6  ;;  %v2398_v11 = vld [vmem:[%s3883_s1 + $0x40] ss:$16 sps:$4 sm:$0xff]   ;;  %v2399_v12 = vld [vmem:[%s3883_s1 + $0x48] ss:$16 sps:$4 sm:$0xff]   ;;  %v2400_v13 = vld [vmem:[%s3883_s1 + $0x64] ss:$16 sps:$4 sm:$0xff]  }
  0x1a   : > { %v2402_v14 = vld [vmem:[%s3883_s1 + $0x6c] ss:$16 sps:$4 sm:$0xff]   ;;  %v2404_v15 = vld [vmem:[%s3883_s1 + $0x60] ss:$16 sps:$4 sm:$0xff]   ;;  %s3947_s7 = smov (!%p166_p10, %s2200_s7), 191  ;;  %vm599_vm1 = vcmask 982016  }
  0x1b   : > { %v2405_v16 = vld [vmem:[%s3883_s1 + $0x68] ss:$16 sps:$4 sm:$0xff]   ;;  %v2406_v17 = vld [vmem:[%s3883_s1 + $0x84] ss:$16 sps:$4 sm:$0xff]   ;;  %v2408_v18 = vld [vmem:[%s3883_s1 + $0x8c] ss:$16 sps:$4 sm:$0xff]  }
  0x1c   : > { %712 = vmatpush1.bf16.msra.mxu0 %v2392_v7  ;;  %1065 = vmatpush1.bf16.msra.mxu1 %v2393_v8  ;;  %v2410_v19 = vld [vmem:[%s3883_s1 + $0x80] ss:$16 sps:$4 sm:$0xff]   ;;  %v2411_v20 = vld [vmem:[%s3883_s1 + $0x88] ss:$16 sps:$4 sm:$0xff]   ;;  %s2201_s30 = sshll.u32 %s3947_s7, 2  ;;  %v270_v0 = vshrl.u32 %v269_v63, 7 }
  0x1d   : > { %713 = vmatprep.subr.bf16.mxu0 %v2394_v9  ;;  %1066 = vmatprep.subr.bf16.mxu1 %v2396_v10  ;;  %v2412_v21 = vld [vmem:[%s3883_s1 + $0xa4] ss:$16 sps:$4 sm:$0xff]   ;;  %v2414_v22 = vld [vmem:[%s3883_s1 + $0xac] ss:$16 sps:$4 sm:$0xff]   ;;  %v2416_v23 = vld [vmem:[%s3883_s1 + $0xa0] ss:$16 sps:$4 sm:$0xff]   ;;  %s2676_s20 = scalar_lea.vmem %s3882_s0, %s2201_s30 }
  0x1e   : > { %v2417_v24 = vld [vmem:[%s3883_s1 + $0xa8] ss:$16 sps:$4 sm:$0xff]   ;;  %v2418_v25 = vld [vmem:[%s3883_s1 + $0xc4] ss:$16 sps:$4 sm:$0xff]   ;;  %v2420_v26 = vld [vmem:[%s3883_s1 + $0xcc] ss:$16 sps:$4 sm:$0xff]  }
  0x1f   : > { %v265_v27 = vld [vmem:[%s3883_s1 + $0xe0] sm:$0xff]  ;;  %v266_v28 = vld [vmem:[%s3883_s1 + $0xe8] sm:$0xff]  ;;  %v2430_v39 = vld [vmem:[%s2676_s20 + $0x10] sm:$0xff]   ;;  %v271_v3 = vsub.s32 0, %v270_v0  ;;  %v279_v4 = vsub.s32 2, %v270_v0  ;;  %v275_v6 = vsub.s32 1, %v270_v0 }
  0x20   : > { %714 = vmatpush1.bf16.msra.mxu0 %v2398_v11  ;;  %1067 = vmatpush1.bf16.msra.mxu1 %v2399_v12  ;;  %v2422_v29 = vld [vmem:[%s3883_s1 + $0xc0] ss:$16 sps:$4 sm:$0xff]   ;;  %v2423_v30 = vld [vmem:[%s3883_s1 + $0xc8] ss:$16 sps:$4 sm:$0xff]   ;;  %v2263_v31 = vcombine.high %v265_v27, %v265_v27  ;;  %v2265_v32 = vcombine.high %v266_v28, %v266_v28  ;;  %v2262_v33 = vcombine.low %v265_v27, %v265_v27  ;;  %v283_v7 = vsub.s32 3, %v270_v0  ;;  %s2525_s17 = smov 64  }
  0x21   : > { %715 = vmatprep.subr.bf16.mxu0 %v2400_v13  ;;  %1068 = vmatprep.subr.bf16.mxu1 %v2402_v14  ;;  %v2264_v34 = vcombine.low %v266_v28, %v266_v28  ;;  %v2428_v37 = vld [vmem:[%s2676_s20] sm:$0xff]   ;;  %v2429_v38 = vld [vmem:[%s2676_s20 + $0x8] sm:$0xff]   ;;  %v2431_v40 = vld [vmem:[%s2676_s20 + $0x18] sm:$0xff]   ;;  %s2526_s7 = smov 32   ;;  %s162_s19 = sand.u32 1, %s2514_s13  }
  0x22   : > { %v698_v35 = vsel %vm696_vm0, %v2262_v33, 0  ;;  %v2432_v41 = vld [vmem:[%s2676_s20 + $0x20] sm:$0xff]   ;;  %v2433_v42 = vld [vmem:[%s2676_s20 + $0x28] sm:$0xff]   ;;  %v2434_v43 = vld [vmem:[%s2676_s20 + $0x30] sm:$0xff]   ;;  %s2337_s25 = sshll.u32 %s2571_s16, 13  ;;  %s3841_s4 = scalar_lea.sflag [#allocation3], %s162_s19 }
  0x23   : > { %v704_v36 = vsel %vm696_vm0, %v2264_v34, 0  ;;  %v2435_v44 = vld [vmem:[%s2676_s20 + $0x38] sm:$0xff]   ;;  %v2436_v45 = vld [vmem:[%s2676_s20 + $0x40] sm:$0xff]   ;;  %v2437_v46 = vld [vmem:[%s2676_s20 + $0x48] sm:$0xff]   ;;  %s3834_s29 = scalar_lea.hbm %s3885_s3, %s2337_s25  ;;  %s2527_s5 = smov [#allocation2]  }
  0x24   : > { %716 = vmatpush1.bf16.msra.mxu0 %v2404_v15  ;;  %1069 = vmatpush1.bf16.msra.mxu1 %v2405_v16  ;;  %v2438_v47 = vld [vmem:[%s2676_s20 + $0x50] sm:$0xff]   ;;  %v2439_v48 = vld [vmem:[%s2676_s20 + $0x58] sm:$0xff]   ;;  %v2440_v49 = vld [vmem:[%s2676_s20 + $0x60] sm:$0xff]   ;;  %s2464_s30 = sshll.u32 %s2527_s5, 4  ;;  %s2465_s30 = int_to_ptr.vmem [resolvable:$false] %s2464_s30 }
  0x25   : > { %717 = vmatprep.subr.bf16.mxu0 %v2406_v17  ;;  %1070 = vmatprep.subr.bf16.mxu1 %v2408_v18  ;;  %v2441_v50 = vld [vmem:[%s2676_s20 + $0x68] sm:$0xff]   ;;  %v2442_v51 = vld [vmem:[%s2676_s20 + $0x70] sm:$0xff]   ;;  %v2443_v52 = vld [vmem:[%s2676_s20 + $0x78] sm:$0xff]   ;;  %s2466_s6 = scalar_lea.vmem %s2465_s30, 16384 }
  0x26   : > { %v2444_v53 = vld [vmem:[%s2676_s20 + $0x80] sm:$0xff]   ;;  %v2445_v54 = vld [vmem:[%s2676_s20 + $0x88] sm:$0xff]   ;;  %v2446_v55 = vld [vmem:[%s2676_s20 + $0x90] sm:$0xff]  }
  0x27   : > { %v2447_v56 = vld [vmem:[%s2676_s20 + $0x98] sm:$0xff]   ;;  %v2448_v57 = vld [vmem:[%s2676_s20 + $0xa0] sm:$0xff]   ;;  %v2449_v58 = vld [vmem:[%s2676_s20 + $0xa8] sm:$0xff]  }
  0x28   : > { %718 = vmatpush1.bf16.msra.mxu0 %v2410_v19  ;;  %1071 = vmatpush1.bf16.msra.mxu1 %v2411_v20  ;;  %v2450_v59 = vld [vmem:[%s2676_s20 + $0xb0] sm:$0xff]   ;;  %v2451_v60 = vld [vmem:[%s2676_s20 + $0xb8] sm:$0xff]   ;;  %v2452_v61 = vld [vmem:[%s2676_s20 + $0xc0] sm:$0xff]  }
  0x29   : > { %719 = vmatprep.subr.bf16.mxu0 %v2412_v21  ;;  %1072 = vmatprep.subr.bf16.mxu1 %v2414_v22  ;;  %v2453_v62 = vld [vmem:[%s2676_s20 + $0xc8] sm:$0xff]   ;;  %v2454_v1 = vld [vmem:[%s2676_s20 + $0xd0] sm:$0xff]   ;;  %v267_v5 = vld [vmem:[%s3884_s2] sm:$0xf] }
  0x2a   : > { %v2832_v8 = vrot.slane %v267_v5, %v271_v3  ;;  %v2834_v9 = vrot.slane %v267_v5, %v279_v4  ;;  %v2836_v10 = vrot.slane %v267_v5, %v275_v6  ;;  %v2838_v11 = vrot.slane %v267_v5, %v283_v7  ;;  %v2455_v18 = vld [vmem:[%s2676_s20 + $0xd8] sm:$0xff]   ;;  %v2457_v0 = vld [vmem:[%s2676_s20 + $0xe8] sm:$0xff]  }
  0x2c   : > { %720 = vmatpush1.bf16.msra.mxu0 %v2416_v23  ;;  %1073 = vmatpush1.bf16.msra.mxu1 %v2417_v24 }
  0x2d   : > { %721 = vmatprep.subr.bf16.mxu0 %v2418_v25  ;;  %1074 = vmatprep.subr.bf16.mxu1 %v2420_v26 }
  0x30   : > { %722 = vmatpush1.bf16.msra.mxu0 %v2422_v29  ;;  %1075 = vmatpush1.bf16.msra.mxu1 %v2423_v30 }
  0x31   : > { %2266 = vmatprep.subr.msk.bf16.mxu0 %vm696_vm0, %v2263_v31  ;;  %2299 = vmatprep.subr.msk.bf16.mxu1 %vm696_vm0, %v2265_v32 }
  0x34   : > { %724 = vmatpush1.bf16.msra.mxu0 %v698_v35  ;;  %1077 = vmatpush1.bf16.msra.mxu1 %v704_v36 }
  0x37   : > { %2267 = vmatmul.mubr.msk.bf16.vlgmr.msra.gmra.mrb[0].mxu0 %vm599_vm1, %v2428_v37  ;;  %2300 = vmatmul.mubr.msk.bf16.vlgmr.msra.gmra.mrb[0].mxu1 %vm599_vm1, %v2428_v37 }
  0x38   : > { %751 = vmatprep.mubr.bf16.mxu0 %v2524_v2  ;;  %1104 = vmatprep.mubr.bf16.mxu1 %v2524_v2 }
  0x3f   : > { %2268 = vmatmul.mubr.msk.bf16.gmra.mrb[4].mxu0 %vm599_vm1, %v2429_v38  ;;  %2301 = vmatmul.mubr.msk.bf16.gmra.mrb[4].mxu1 %vm599_vm1, %v2429_v38 }
  0x40   : > { %761 = vmatprep.mubr.bf16.mxu0 %v2524_v2  ;;  %1114 = vmatprep.mubr.bf16.mxu1 %v2524_v2 }
  0x47   : > { %2269 = vmatmul.mubr.msk.bf16.gmra.mrb[8].mxu0 %vm599_vm1, %v2430_v39  ;;  %2302 = vmatmul.mubr.msk.bf16.gmra.mrb[8].mxu1 %vm599_vm1, %v2430_v39 }
  0x48   : > { %771 = vmatprep.mubr.bf16.mxu0 %v2524_v2  ;;  %1124 = vmatprep.mubr.bf16.mxu1 %v2524_v2 }
  0x4f   : > { %2270 = vmatmul.mubr.msk.bf16.gmra.mrb[12].mxu0 %vm599_vm1, %v2431_v40  ;;  %2303 = vmatmul.mubr.msk.bf16.gmra.mrb[12].mxu1 %vm599_vm1, %v2431_v40 }
  0x50   : > { %781 = vmatprep.mubr.bf16.mxu0 %v2524_v2  ;;  %1134 = vmatprep.mubr.bf16.mxu1 %v2524_v2 }
  0x57   : > { %2271 = vmatmul.mubr.msk.bf16.gmra.mrb[16].mxu0 %vm599_vm1, %v2432_v41  ;;  %2304 = vmatmul.mubr.msk.bf16.gmra.mrb[16].mxu1 %vm599_vm1, %v2432_v41  ;;  %v2456_v41 = vld [vmem:[%s2676_s20 + $0xe0] sm:$0xff]  }
  0x58   : > { %791 = vmatprep.mubr.bf16.mxu0 %v2524_v2  ;;  %1144 = vmatprep.mubr.bf16.mxu1 %v2524_v2 }
  0x5f   : > { %2272 = vmatmul.mubr.msk.bf16.gmra.mrb[20].mxu0 %vm599_vm1, %v2433_v42  ;;  %2305 = vmatmul.mubr.msk.bf16.gmra.mrb[20].mxu1 %vm599_vm1, %v2433_v42 }
  0x60   : > { %801 = vmatprep.mubr.bf16.mxu0 %v2524_v2  ;;  %1154 = vmatprep.mubr.bf16.mxu1 %v2524_v2 }
  0x67   : > { %2273 = vmatmul.mubr.msk.bf16.gmra.mrb[24].mxu0 %vm599_vm1, %v2434_v43  ;;  %2306 = vmatmul.mubr.msk.bf16.gmra.mrb[24].mxu1 %vm599_vm1, %v2434_v43 }
  0x68   : > { %811 = vmatprep.mubr.bf16.mxu0 %v2524_v2  ;;  %1164 = vmatprep.mubr.bf16.mxu1 %v2524_v2 }
  0x6f   : > { %2274 = vmatmul.mubr.msk.bf16.gmra.mrb[28].mxu0 %vm599_vm1, %v2435_v44  ;;  %2307 = vmatmul.mubr.msk.bf16.gmra.mrb[28].mxu1 %vm599_vm1, %v2435_v44 }
  0x70   : > { %821 = vmatprep.mubr.bf16.mxu0 %v2524_v2  ;;  %1174 = vmatprep.mubr.bf16.mxu1 %v2524_v2 }
  0x77   : > { %2275 = vmatmul.mubr.msk.bf16.gmra.mrb[32].mxu0 %vm599_vm1, %v2436_v45  ;;  %2308 = vmatmul.mubr.msk.bf16.gmra.mrb[32].mxu1 %vm599_vm1, %v2436_v45 }
  0x78   : > { %831 = vmatprep.mubr.bf16.mxu0 %v2524_v2  ;;  %1184 = vmatprep.mubr.bf16.mxu1 %v2524_v2 }
  0x7f   : > { %2276 = vmatmul.mubr.msk.bf16.gmra.mrb[36].mxu0 %vm599_vm1, %v2437_v46  ;;  %2309 = vmatmul.mubr.msk.bf16.gmra.mrb[36].mxu1 %vm599_vm1, %v2437_v46 }
  0x80   : > { %841 = vmatprep.mubr.bf16.mxu0 %v2524_v2  ;;  %1194 = vmatprep.mubr.bf16.mxu1 %v2524_v2 }
  0x87   : > { %2277 = vmatmul.mubr.msk.bf16.gmra.mrb[40].mxu0 %vm599_vm1, %v2438_v47  ;;  %2310 = vmatmul.mubr.msk.bf16.gmra.mrb[40].mxu1 %vm599_vm1, %v2438_v47 }
  0x88   : > { %851 = vmatprep.mubr.bf16.mxu0 %v2524_v2  ;;  %1204 = vmatprep.mubr.bf16.mxu1 %v2524_v2 }
  0x8f   : > { %2278 = vmatmul.mubr.msk.bf16.gmra.mrb[44].mxu0 %vm599_vm1, %v2439_v48  ;;  %2311 = vmatmul.mubr.msk.bf16.gmra.mrb[44].mxu1 %vm599_vm1, %v2439_v48 }
  0x90   : > { %861 = vmatprep.mubr.bf16.mxu0 %v2524_v2  ;;  %1214 = vmatprep.mubr.bf16.mxu1 %v2524_v2 }
  0x97   : > { %2279 = vmatmul.mubr.msk.bf16.gmra.mrb[48].mxu0 %vm599_vm1, %v2440_v49  ;;  %2312 = vmatmul.mubr.msk.bf16.gmra.mrb[48].mxu1 %vm599_vm1, %v2440_v49 }
  0x98   : > { %871 = vmatprep.mubr.bf16.mxu0 %v2524_v2  ;;  %1224 = vmatprep.mubr.bf16.mxu1 %v2524_v2 }
  0x9f   : > { %2280 = vmatmul.mubr.msk.bf16.gmra.mrb[52].mxu0 %vm599_vm1, %v2441_v50  ;;  %2313 = vmatmul.mubr.msk.bf16.gmra.mrb[52].mxu1 %vm599_vm1, %v2441_v50 }
  0xa0   : > { %881 = vmatprep.mubr.bf16.mxu0 %v2524_v2  ;;  %1234 = vmatprep.mubr.bf16.mxu1 %v2524_v2 }
  0xa7   : > { %2281 = vmatmul.mubr.msk.bf16.gmra.mrb[56].mxu0 %vm599_vm1, %v2442_v51  ;;  %2314 = vmatmul.mubr.msk.bf16.gmra.mrb[56].mxu1 %vm599_vm1, %v2442_v51 }
  0xa8   : > { %891 = vmatprep.mubr.bf16.mxu0 %v2524_v2  ;;  %1244 = vmatprep.mubr.bf16.mxu1 %v2524_v2 }
  0xaf   : > { %2282 = vmatmul.mubr.msk.bf16.gmra.mrb[60].mxu0 %vm599_vm1, %v2443_v52  ;;  %2315 = vmatmul.mubr.msk.bf16.gmra.mrb[60].mxu1 %vm599_vm1, %v2443_v52 }
  0xb0   : > { %901 = vmatprep.mubr.bf16.mxu0 %v2524_v2  ;;  %1254 = vmatprep.mubr.bf16.mxu1 %v2524_v2 }
  0xb7   : > { %2283 = vmatmul.mubr.msk.bf16.gmra.mrb[64].mxu0 %vm599_vm1, %v2444_v53  ;;  %2316 = vmatmul.mubr.msk.bf16.gmra.mrb[64].mxu1 %vm599_vm1, %v2444_v53 }
  0xb8   : > { %911 = vmatprep.mubr.bf16.mxu0 %v2524_v2  ;;  %1264 = vmatprep.mubr.bf16.mxu1 %v2524_v2 }
  0xbf   : > { %2284 = vmatmul.mubr.msk.bf16.gmra.mrb[68].mxu0 %vm599_vm1, %v2445_v54  ;;  %2317 = vmatmul.mubr.msk.bf16.gmra.mrb[68].mxu1 %vm599_vm1, %v2445_v54 }
  0xc0   : > { %921 = vmatprep.mubr.bf16.mxu0 %v2524_v2  ;;  %1274 = vmatprep.mubr.bf16.mxu1 %v2524_v2 }
  0xc7   : > { %2285 = vmatmul.mubr.msk.bf16.gmra.mrb[72].mxu0 %vm599_vm1, %v2446_v55  ;;  %2318 = vmatmul.mubr.msk.bf16.gmra.mrb[72].mxu1 %vm599_vm1, %v2446_v55 }
  0xc8   : > { %931 = vmatprep.mubr.bf16.mxu0 %v2524_v2  ;;  %1284 = vmatprep.mubr.bf16.mxu1 %v2524_v2 }
  0xcf   : > { %2286 = vmatmul.mubr.msk.bf16.gmra.mrb[76].mxu0 %vm599_vm1, %v2447_v56  ;;  %2319 = vmatmul.mubr.msk.bf16.gmra.mrb[76].mxu1 %vm599_vm1, %v2447_v56 }
  0xd0   : > { %941 = vmatprep.mubr.bf16.mxu0 %v2524_v2  ;;  %1294 = vmatprep.mubr.bf16.mxu1 %v2524_v2 }
  0xd7   : > { %2287 = vmatmul.mubr.msk.bf16.gmra.mrb[80].mxu0 %vm599_vm1, %v2448_v57  ;;  %2320 = vmatmul.mubr.msk.bf16.gmra.mrb[80].mxu1 %vm599_vm1, %v2448_v57 }
  0xd8   : > { %951 = vmatprep.mubr.bf16.mxu0 %v2524_v2  ;;  %1304 = vmatprep.mubr.bf16.mxu1 %v2524_v2 }
  0xdf   : > { %2288 = vmatmul.mubr.msk.bf16.gmra.mrb[84].mxu0 %vm599_vm1, %v2449_v58  ;;  %2321 = vmatmul.mubr.msk.bf16.gmra.mrb[84].mxu1 %vm599_vm1, %v2449_v58 }
  0xe0   : > { %961 = vmatprep.mubr.bf16.mxu0 %v2524_v2  ;;  %1314 = vmatprep.mubr.bf16.mxu1 %v2524_v2 }
  0xe7   : > { %2289 = vmatmul.mubr.msk.bf16.gmra.mrb[88].mxu0 %vm599_vm1, %v2450_v59  ;;  %2322 = vmatmul.mubr.msk.bf16.gmra.mrb[88].mxu1 %vm599_vm1, %v2450_v59 }
  0xe8   : > { %971 = vmatprep.mubr.bf16.mxu0 %v2524_v2  ;;  %1324 = vmatprep.mubr.bf16.mxu1 %v2524_v2 }
  0xef   : > { %2290 = vmatmul.mubr.msk.bf16.gmra.mrb[92].mxu0 %vm599_vm1, %v2451_v60  ;;  %2323 = vmatmul.mubr.msk.bf16.gmra.mrb[92].mxu1 %vm599_vm1, %v2451_v60 }
  0xf0   : > { %981 = vmatprep.mubr.bf16.mxu0 %v2524_v2  ;;  %1334 = vmatprep.mubr.bf16.mxu1 %v2524_v2 }
  0xf7   : > { %2291 = vmatmul.mubr.msk.bf16.gmra.mrb[96].mxu0 %vm599_vm1, %v2452_v61  ;;  %2324 = vmatmul.mubr.msk.bf16.gmra.mrb[96].mxu1 %vm599_vm1, %v2452_v61 }
  0xf8   : > { %991 = vmatprep.mubr.bf16.mxu0 %v2524_v2  ;;  %1344 = vmatprep.mubr.bf16.mxu1 %v2524_v2 }
  0xff   : > { %2292 = vmatmul.mubr.msk.bf16.gmra.mrb[100].mxu0 %vm599_vm1, %v2453_v62  ;;  %2325 = vmatmul.mubr.msk.bf16.gmra.mrb[100].mxu1 %vm599_vm1, %v2453_v62 }
 0x100   : > { %1001 = vmatprep.mubr.bf16.mxu0 %v2524_v2  ;;  %1354 = vmatprep.mubr.bf16.mxu1 %v2524_v2 }
 0x107   : > { %2293 = vmatmul.mubr.msk.bf16.gmra.mrb[104].mxu0 %vm599_vm1, %v2454_v1  ;;  %2326 = vmatmul.mubr.msk.bf16.gmra.mrb[104].mxu1 %vm599_vm1, %v2454_v1 }
 0x108   : > { %1011 = vmatprep.mubr.bf16.mxu0 %v2524_v2  ;;  %1364 = vmatprep.mubr.bf16.mxu1 %v2524_v2 }
 0x10a   : > { %v743_v12 = vpop.f32.mrb[0].mxu0  ;;  %v1096_v13 = vpop.f32.mrb[0].mxu1 }
 0x10b   : > { %v744_v14 = vadd.f32 %v743_v12, %v2832_v8  ;;  %v1097_v15 = vadd.f32 %v1096_v13, %v2834_v9  ;;  %v745_v16 = vpop.f32.mrb[1].mxu0  ;;  %v1098_v17 = vpop.f32.mrb[1].mxu1 }
 0x10c   : > { %v746_v19 = vadd.f32 %v745_v16, %v2836_v10  ;;  %v1099_v20 = vadd.f32 %v1098_v17, %v2838_v11  ;;  %v747_v21 = vpop.f32.mrb[2].mxu0  ;;  %v1100_v22 = vpop.f32.mrb[2].mxu1 }
 0x10d   : > { %v748_v23 = vadd.f32 %v747_v21, %v2832_v8  ;;  %v1101_v24 = vadd.f32 %v1100_v22, %v2834_v9  ;;  %v749_v25 = vpop.f32.mrb[3].mxu0  ;;  %v1102_v26 = vpop.f32.mrb[3].mxu1 }
 0x10e   : > { %v1415_v27 = vmax.f32 %v744_v14, %v746_v19  ;;  %v1479_v28 = vmax.f32 %v1097_v15, %v1099_v20  ;;  %v750_v29 = vadd.f32 %v749_v25, %v2836_v10  ;;  %v1103_v30 = vadd.f32 %v1102_v26, %v2838_v11 }
 0x10f   : > { %2294 = vmatmul.mubr.msk.bf16.gmra.mrb[108].mxu0 %vm599_vm1, %v2455_v18  ;;  %2327 = vmatmul.mubr.msk.bf16.gmra.mrb[108].mxu1 %vm599_vm1, %v2455_v18 }
 0x110   : > { %v1416_v31 = vmax.f32 %v748_v23, %v750_v29  ;;  %v1480_v32 = vmax.f32 %v1101_v24, %v1103_v30  ;;  %v2853_v33 = vmax.f32 %v1415_v27, %v1479_v28  ;;  %1021 = vmatprep.mubr.bf16.mxu0 %v2524_v2  ;;  %1374 = vmatprep.mubr.bf16.mxu1 %v2524_v2  ;;  %v2458_v28 = vld [vmem:[%s2676_s20 + $0xf0] sm:$0xff]  }
 0x112   : > { %v753_v34 = vpop.f32.mrb[4].mxu0  ;;  %v1106_v35 = vpop.f32.mrb[4].mxu1  ;;  %1607 = vrot.lane.b32.xlu0 %v2853_v33, %s2525_s17  ;;  %v2859_v36 = vmax.f32 %v1416_v31, %v1480_v32 }
 0x113   : > { %v754_v37 = vadd.f32 %v753_v34, %v2832_v8  ;;  %v1107_v38 = vadd.f32 %v1106_v35, %v2834_v9  ;;  %v755_v39 = vpop.f32.mrb[5].mxu0  ;;  %v1108_v40 = vpop.f32.mrb[5].mxu1 }
 0x114   : > { %v756_v42 = vadd.f32 %v755_v39, %v2836_v10  ;;  %v1109_v43 = vadd.f32 %v1108_v40, %v2838_v11  ;;  %v757_v44 = vpop.f32.mrb[6].mxu0  ;;  %v1110_v45 = vpop.f32.mrb[6].mxu1 }
 0x115   : > { %v758_v46 = vadd.f32 %v757_v44, %v2832_v8  ;;  %v1111_v47 = vadd.f32 %v1110_v45, %v2834_v9  ;;  %v759_v48 = vpop.f32.mrb[7].mxu0  ;;  %v1112_v49 = vpop.f32.mrb[7].mxu1 }
 0x116   : > { %v1417_v50 = vmax.f32 %v754_v37, %v756_v42  ;;  %v1481_v51 = vmax.f32 %v1107_v38, %v1109_v43  ;;  %v760_v52 = vadd.f32 %v759_v48, %v2836_v10  ;;  %v1113_v53 = vadd.f32 %v1112_v49, %v2838_v11  ;;  %1609 = vrot.lane.b32.xlu0 %v2859_v36, %s2525_s17 }
 0x117   : > { %2295 = vmatmul.mubr.msk.bf16.gmra.mrb[112].mxu0 %vm599_vm1, %v2456_v41  ;;  %2328 = vmatmul.mubr.msk.bf16.gmra.mrb[112].mxu1 %vm599_vm1, %v2456_v41 }
 0x118   : > { %v1418_v54 = vmax.f32 %v758_v46, %v760_v52  ;;  %v1482_v55 = vmax.f32 %v1111_v47, %v1113_v53  ;;  %v2874_v56 = vmax.f32 %v1417_v50, %v1481_v51  ;;  %1031 = vmatprep.mubr.bf16.mxu0 %v2524_v2  ;;  %1384 = vmatprep.mubr.bf16.mxu1 %v2524_v2  ;;  %v2459_v53 = vld [vmem:[%s2676_s20 + $0xf8] sm:$0xff]   ;;  %s2199_s20 = sshll.u32 %s162_s19, 9 }
 0x119   : > { %s3504_s24 = scalar_lea.vmem [#allocation2], %s2199_s20 }
 0x11a   : > { %v763_v57 = vpop.f32.mrb[8].mxu0  ;;  %v1116_v58 = vpop.f32.mrb[8].mxu1  ;;  %1611 = vrot.lane.b32.xlu1 %v2874_v56, %s2525_s17  ;;  %v2880_v59 = vmax.f32 %v1418_v54, %v1482_v55  ;;  %s2133_s26 = sshll.u32 %s3504_s24, 4  ;;  %s3836_s26 = int_to_ptr.vmem [resolvable:$true] %s2133_s26 }
 0x11b   : > { %v764_v60 = vadd.f32 %v763_v57, %v2832_v8  ;;  %v1117_v61 = vadd.f32 %v1116_v58, %v2834_v9  ;;  %v765_v62 = vpop.f32.mrb[9].mxu0  ;;  %v1118_v63 = vpop.f32.mrb[9].mxu1  ;;  %s2460_s16 = scalar_lea.vmem %s3836_s26, 8192  ;;  %p2467_p0 = scmp.lt.s32.totalorder %s3836_s26, %s2465_s30 }
 0x11c   : > { %v766_v1 = vadd.f32 %v765_v62, %v2836_v10  ;;  %v1119_v3 = vadd.f32 %v1118_v63, %v2838_v11  ;;  %v767_v4 = vpop.f32.mrb[10].mxu0  ;;  %v1120_v5 = vpop.f32.mrb[10].mxu1  ;;  %p2461_p11 = scmp.ne.s32.totalorder %s3836_s26, %s2460_s16  ;;  %p2468_p1 = scmp.lt.s32.totalorder %s2466_s6, %s2460_s16 }
 0x11d   : > { %v768_v6 = vadd.f32 %v767_v4, %v2832_v8  ;;  %v1121_v7 = vadd.f32 %v1120_v5, %v2834_v9  ;;  %v769_v12 = vpop.f32.mrb[11].mxu0  ;;  %v1122_v13 = vpop.f32.mrb[11].mxu1 }
 0x11e   : > { %v1419_v14 = vmax.f32 %v764_v60, %v766_v1  ;;  %v1483_v15 = vmax.f32 %v1117_v61, %v1119_v3  ;;  %v770_v16 = vadd.f32 %v769_v12, %v2836_v10  ;;  %v1123_v17 = vadd.f32 %v1122_v13, %v2838_v11  ;;  %1613 = vrot.lane.b32.xlu1 %v2880_v59, %s2525_s17  ;;  %p2462_p12 = pnand %p2461_p11, %p2588_p5  ;;  %p2469_p2 = por %p2468_p1, %p2467_p0 }
 0x11f   : > { %2296 = vmatmul.mubr.msk.bf16.gmra.mrb[116].mxu0 %vm599_vm1, %v2457_v0  ;;  %2329 = vmatmul.mubr.msk.bf16.gmra.mrb[116].mxu1 %vm599_vm1, %v2457_v0 }
 0x120   : > { %v1420_v18 = vmax.f32 %v768_v6, %v770_v16  ;;  %v1484_v19 = vmax.f32 %v1121_v7, %v1123_v17  ;;  %v2895_v20 = vmax.f32 %v1419_v14, %v1483_v15  ;;  %1041 = vmatprep.mubr.bf16.mxu0 %v2524_v2  ;;  %1394 = vmatprep.mubr.bf16.mxu1 %v2524_v2  ;;  %p2463_p13 = pneg %p2462_p12 }
 0x122   : > { %v773_v21 = vpop.f32.mrb[12].mxu0  ;;  %v1126_v22 = vpop.f32.mrb[12].mxu1  ;;  %1615 = vrot.lane.b32.xlu0 %v2895_v20, %s2525_s17  ;;  %v2901_v23 = vmax.f32 %v1420_v18, %v1484_v19  ;;  %p2470_p3 = pnand %p2469_p2, %p2463_p13 }
 0x123   : > { %v774_v24 = vadd.f32 %v773_v21, %v2832_v8  ;;  %v1127_v25 = vadd.f32 %v1126_v22, %v2834_v9  ;;  %v775_v26 = vpop.f32.mrb[13].mxu0  ;;  %v1128_v27 = vpop.f32.mrb[13].mxu1 }
 0x124   : > { %v776_v29 = vadd.f32 %v775_v26, %v2836_v10  ;;  %v1129_v30 = vadd.f32 %v1128_v27, %v2838_v11  ;;  %v777_v31 = vpop.f32.mrb[14].mxu0  ;;  %v1130_v32 = vpop.f32.mrb[14].mxu1  ;;  %1617 = vrot.lane.b32.xlu1 %v2901_v23, %s2525_s17 }
 0x125   : > { %v778_v34 = vadd.f32 %v777_v31, %v2832_v8  ;;  %v1131_v35 = vadd.f32 %v1130_v32, %v2834_v9  ;;  %v779_v37 = vpop.f32.mrb[15].mxu0  ;;  %v1132_v38 = vpop.f32.mrb[15].mxu1 }
 0x126   : > { %v1421_v39 = vmax.f32 %v774_v24, %v776_v29  ;;  %v1485_v40 = vmax.f32 %v1127_v25, %v1129_v30  ;;  %v780_v41 = vadd.f32 %v779_v37, %v2836_v10  ;;  %v1133_v42 = vadd.f32 %v1132_v38, %v2838_v11 }
 0x127   : > { %2297 = vmatmul.mubr.msk.bf16.gmra.mrb[120].mxu0 %vm599_vm1, %v2458_v28  ;;  %2330 = vmatmul.mubr.msk.bf16.gmra.mrb[120].mxu1 %vm599_vm1, %v2458_v28 }
 0x128   : > { %v1422_v43 = vmax.f32 %v778_v34, %v780_v41  ;;  %v1486_v44 = vmax.f32 %v1131_v35, %v1133_v42  ;;  %v2916_v45 = vmax.f32 %v1421_v39, %v1485_v40  ;;  %1051 = vmatprep.mubr.bf16.mxu0 %v2524_v2  ;;  %1404 = vmatprep.mubr.bf16.mxu1 %v2524_v2 }
 0x12a   : > { %v783_v46 = vpop.f32.mrb[16].mxu0  ;;  %v1136_v47 = vpop.f32.mrb[16].mxu1  ;;  %1619 = vrot.lane.b32.xlu0 %v2916_v45, %s2525_s17  ;;  %v2922_v48 = vmax.f32 %v1422_v43, %v1486_v44 }
 0x12b   : > { %v784_v49 = vadd.f32 %v783_v46, %v2832_v8  ;;  %v1137_v50 = vadd.f32 %v1136_v47, %v2834_v9  ;;  %v785_v51 = vpop.f32.mrb[17].mxu0  ;;  %v1138_v52 = vpop.f32.mrb[17].mxu1 }
 0x12c   : > { %v786_v54 = vadd.f32 %v785_v51, %v2836_v10  ;;  %v1139_v55 = vadd.f32 %v1138_v52, %v2838_v11  ;;  %v787_v57 = vpop.f32.mrb[18].mxu0  ;;  %v1140_v2 = vpop.f32.mrb[18].mxu1  ;;  %1621 = vrot.lane.b32.xlu1 %v2922_v48, %s2525_s17 }
 0x12d   : > { %v788_v58 = vadd.f32 %v787_v57, %v2832_v8  ;;  %v1141_v60 = vadd.f32 %v1140_v2, %v2834_v9  ;;  %v789_v61 = vpop.f32.mrb[19].mxu0  ;;  %v1142_v62 = vpop.f32.mrb[19].mxu1 }
 0x12e   : > { %v1423_v63 = vmax.f32 %v784_v49, %v786_v54  ;;  %v1487_v0 = vmax.f32 %v1137_v50, %v1139_v55  ;;  %v790_v1 = vadd.f32 %v789_v61, %v2836_v10  ;;  %v1143_v3 = vadd.f32 %v1142_v62, %v2838_v11 }
 0x12f   : > { %2298 = vmatmul.mubr.msk.bf16.gmra.mrb[124].mxu0 %vm599_vm1, %v2459_v53  ;;  %2331 = vmatmul.mubr.msk.bf16.gmra.mrb[124].mxu1 %vm599_vm1, %v2459_v53 }
 0x130   : > { %v1424_v4 = vmax.f32 %v788_v58, %v790_v1  ;;  %v1488_v5 = vmax.f32 %v1141_v60, %v1143_v3  ;;  %v2937_v6 = vmax.f32 %v1423_v63, %v1487_v0 }
 0x132   : > { %v793_v7 = vpop.f32.mrb[20].mxu0  ;;  %v1146_v12 = vpop.f32.mrb[20].mxu1  ;;  %1623 = vrot.lane.b32.xlu0 %v2937_v6, %s2525_s17  ;;  %v2941_v13 = vmax.f32 %v1424_v4, %v1488_v5 }
 0x133   : > { %v794_v14 = vadd.f32 %v793_v7, %v2832_v8  ;;  %v1147_v15 = vadd.f32 %v1146_v12, %v2834_v9  ;;  %v795_v16 = vpop.f32.mrb[21].mxu0  ;;  %v1148_v17 = vpop.f32.mrb[21].mxu1 }
 0x134   : > { %v796_v18 = vadd.f32 %v795_v16, %v2836_v10  ;;  %v1149_v19 = vadd.f32 %v1148_v17, %v2838_v11  ;;  %v797_v21 = vpop.f32.mrb[22].mxu0  ;;  %v1150_v22 = vpop.f32.mrb[22].mxu1  ;;  %1625 = vrot.lane.b32.xlu1 %v2941_v13, %s2525_s17 }
 0x135   : > { %v798_v24 = vadd.f32 %v797_v21, %v2832_v8  ;;  %v1151_v25 = vadd.f32 %v1150_v22, %v2834_v9  ;;  %v799_v26 = vpop.f32.mrb[23].mxu0  ;;  %v1152_v27 = vpop.f32.mrb[23].mxu1 }
 0x136   : > { %v1425_v28 = vmax.f32 %v794_v14, %v796_v18  ;;  %v1489_v29 = vmax.f32 %v1147_v15, %v1149_v19  ;;  %v800_v30 = vadd.f32 %v799_v26, %v2836_v10  ;;  %v1153_v31 = vadd.f32 %v1152_v27, %v2838_v11 }
 0x138   : > { %v1426_v32 = vmax.f32 %v798_v24, %v800_v30  ;;  %v1490_v34 = vmax.f32 %v1151_v25, %v1153_v31  ;;  %v2953_v35 = vmax.f32 %v1425_v28, %v1489_v29 }
 0x13a   : > { %v803_v37 = vpop.f32.mrb[24].mxu0  ;;  %v1156_v38 = vpop.f32.mrb[24].mxu1  ;;  %1627 = vrot.lane.b32.xlu0 %v2953_v35, %s2525_s17  ;;  %v2957_v39 = vmax.f32 %v1426_v32, %v1490_v34 }
 0x13b   : > { %v804_v40 = vadd.f32 %v803_v37, %v2832_v8  ;;  %v1157_v41 = vadd.f32 %v1156_v38, %v2834_v9  ;;  %v805_v42 = vpop.f32.mrb[25].mxu0  ;;  %v1158_v43 = vpop.f32.mrb[25].mxu1 }
 0x13c   : > { %v806_v44 = vadd.f32 %v805_v42, %v2836_v10  ;;  %v1159_v46 = vadd.f32 %v1158_v43, %v2838_v11  ;;  %v807_v47 = vpop.f32.mrb[26].mxu0  ;;  %v1160_v49 = vpop.f32.mrb[26].mxu1  ;;  %1629 = vrot.lane.b32.xlu1 %v2957_v39, %s2525_s17 }
 0x13d   : > { %v808_v50 = vadd.f32 %v807_v47, %v2832_v8  ;;  %v1161_v51 = vadd.f32 %v1160_v49, %v2834_v9  ;;  %v809_v52 = vpop.f32.mrb[27].mxu0  ;;  %v1162_v53 = vpop.f32.mrb[27].mxu1 }
 0x13e   : > { %v1427_v54 = vmax.f32 %v804_v40, %v806_v44  ;;  %v1491_v55 = vmax.f32 %v1157_v41, %v1159_v46  ;;  %v810_v57 = vadd.f32 %v809_v52, %v2836_v10  ;;  %v1163_v2 = vadd.f32 %v1162_v53, %v2838_v11 }
 0x140   : > { %v1428_v58 = vmax.f32 %v808_v50, %v810_v57  ;;  %v1492_v60 = vmax.f32 %v1161_v51, %v1163_v2  ;;  %v2969_v61 = vmax.f32 %v1427_v54, %v1491_v55 }
 0x142   : > { %v813_v62 = vpop.f32.mrb[28].mxu0  ;;  %v1166_v63 = vpop.f32.mrb[28].mxu1  ;;  %1631 = vrot.lane.b32.xlu0 %v2969_v61, %s2525_s17  ;;  %v2973_v0 = vmax.f32 %v1428_v58, %v1492_v60 }
 0x143   : > { %v814_v1 = vadd.f32 %v813_v62, %v2832_v8  ;;  %v1167_v3 = vadd.f32 %v1166_v63, %v2834_v9  ;;  %v815_v4 = vpop.f32.mrb[29].mxu0  ;;  %v1168_v5 = vpop.f32.mrb[29].mxu1 }
 0x144   : > { %v816_v7 = vadd.f32 %v815_v4, %v2836_v10  ;;  %v1169_v12 = vadd.f32 %v1168_v5, %v2838_v11  ;;  %v817_v14 = vpop.f32.mrb[30].mxu0  ;;  %v1170_v15 = vpop.f32.mrb[30].mxu1  ;;  %1633 = vrot.lane.b32.xlu1 %v2973_v0, %s2525_s17 }
 0x145   : > { %v818_v16 = vadd.f32 %v817_v14, %v2832_v8  ;;  %v1171_v17 = vadd.f32 %v1170_v15, %v2834_v9  ;;  %v819_v18 = vpop.f32.mrb[31].mxu0  ;;  %v1172_v19 = vpop.f32.mrb[31].mxu1 }
 0x146   : > { %v1429_v21 = vmax.f32 %v814_v1, %v816_v7  ;;  %v1493_v22 = vmax.f32 %v1167_v3, %v1169_v12  ;;  %v820_v24 = vadd.f32 %v819_v18, %v2836_v10  ;;  %v1173_v25 = vadd.f32 %v1172_v19, %v2838_v11 }
 0x148   : > { %v1430_v26 = vmax.f32 %v818_v16, %v820_v24  ;;  %v1494_v27 = vmax.f32 %v1171_v17, %v1173_v25  ;;  %v2985_v28 = vmax.f32 %v1429_v21, %v1493_v22 }
 0x14a   : > { %v823_v29 = vpop.f32.mrb[32].mxu0  ;;  %v1176_v30 = vpop.f32.mrb[32].mxu1  ;;  %1635 = vrot.lane.b32.xlu0 %v2985_v28, %s2525_s17  ;;  %v2989_v31 = vmax.f32 %v1430_v26, %v1494_v27 }
 0x14b   : > { %v824_v32 = vadd.f32 %v823_v29, %v2832_v8  ;;  %v1177_v34 = vadd.f32 %v1176_v30, %v2834_v9  ;;  %v825_v37 = vpop.f32.mrb[33].mxu0  ;;  %v1178_v38 = vpop.f32.mrb[33].mxu1 }
 0x14c   : > { %v826_v40 = vadd.f32 %v825_v37, %v2836_v10  ;;  %v1179_v41 = vadd.f32 %v1178_v38, %v2838_v11  ;;  %v827_v42 = vpop.f32.mrb[34].mxu0  ;;  %v1180_v43 = vpop.f32.mrb[34].mxu1  ;;  %1637 = vrot.lane.b32.xlu1 %v2989_v31, %s2525_s17 }
 0x14d   : > { %v828_v44 = vadd.f32 %v827_v42, %v2832_v8  ;;  %v1181_v46 = vadd.f32 %v1180_v43, %v2834_v9  ;;  %v829_v47 = vpop.f32.mrb[35].mxu0  ;;  %v1182_v49 = vpop.f32.mrb[35].mxu1 }
 0x14e   : > { %v1431_v50 = vmax.f32 %v824_v32, %v826_v40  ;;  %v1495_v51 = vmax.f32 %v1177_v34, %v1179_v41  ;;  %v830_v52 = vadd.f32 %v829_v47, %v2836_v10  ;;  %v1183_v53 = vadd.f32 %v1182_v49, %v2838_v11 }
 0x150   : > { %v1432_v54 = vmax.f32 %v828_v44, %v830_v52  ;;  %v1496_v55 = vmax.f32 %v1181_v46, %v1183_v53  ;;  %v3001_v57 = vmax.f32 %v1431_v50, %v1495_v51 }
 0x152   : > { %v833_v2 = vpop.f32.mrb[36].mxu0  ;;  %v1186_v58 = vpop.f32.mrb[36].mxu1  ;;  %1639 = vrot.lane.b32.xlu0 %v3001_v57, %s2525_s17  ;;  %v3005_v60 = vmax.f32 %v1432_v54, %v1496_v55 }
 0x153   : > { %v834_v62 = vadd.f32 %v833_v2, %v2832_v8  ;;  %v1187_v63 = vadd.f32 %v1186_v58, %v2834_v9  ;;  %v835_v1 = vpop.f32.mrb[37].mxu0  ;;  %v1188_v3 = vpop.f32.mrb[37].mxu1 }
 0x154   : > { %v836_v4 = vadd.f32 %v835_v1, %v2836_v10  ;;  %v1189_v5 = vadd.f32 %v1188_v3, %v2838_v11  ;;  %v837_v7 = vpop.f32.mrb[38].mxu0  ;;  %v1190_v12 = vpop.f32.mrb[38].mxu1  ;;  %1641 = vrot.lane.b32.xlu1 %v3005_v60, %s2525_s17 }
 0x155   : > { %v838_v14 = vadd.f32 %v837_v7, %v2832_v8  ;;  %v1191_v15 = vadd.f32 %v1190_v12, %v2834_v9  ;;  %v839_v16 = vpop.f32.mrb[39].mxu0  ;;  %v1192_v17 = vpop.f32.mrb[39].mxu1 }
 0x156   : > { %v1433_v18 = vmax.f32 %v834_v62, %v836_v4  ;;  %v1497_v19 = vmax.f32 %v1187_v63, %v1189_v5  ;;  %v840_v21 = vadd.f32 %v839_v16, %v2836_v10  ;;  %v1193_v22 = vadd.f32 %v1192_v17, %v2838_v11 }
 0x158   : > { %v1434_v24 = vmax.f32 %v838_v14, %v840_v21  ;;  %v1498_v25 = vmax.f32 %v1191_v15, %v1193_v22  ;;  %v3017_v26 = vmax.f32 %v1433_v18, %v1497_v19 }
 0x15a   : > { %v843_v27 = vpop.f32.mrb[40].mxu0  ;;  %v1196_v29 = vpop.f32.mrb[40].mxu1  ;;  %1643 = vrot.lane.b32.xlu0 %v3017_v26, %s2525_s17  ;;  %v3021_v30 = vmax.f32 %v1434_v24, %v1498_v25 }
 0x15b   : > { %v844_v32 = vadd.f32 %v843_v27, %v2832_v8  ;;  %v1197_v34 = vadd.f32 %v1196_v29, %v2834_v9  ;;  %v845_v37 = vpop.f32.mrb[41].mxu0  ;;  %v1198_v38 = vpop.f32.mrb[41].mxu1 }
 0x15c   : > { %v846_v40 = vadd.f32 %v845_v37, %v2836_v10  ;;  %v1199_v41 = vadd.f32 %v1198_v38, %v2838_v11  ;;  %v847_v42 = vpop.f32.mrb[42].mxu0  ;;  %v1200_v43 = vpop.f32.mrb[42].mxu1  ;;  %1645 = vrot.lane.b32.xlu1 %v3021_v30, %s2525_s17 }
 0x15d   : > { %v848_v44 = vadd.f32 %v847_v42, %v2832_v8  ;;  %v1201_v46 = vadd.f32 %v1200_v43, %v2834_v9  ;;  %v849_v47 = vpop.f32.mrb[43].mxu0  ;;  %v1202_v49 = vpop.f32.mrb[43].mxu1 }
 0x15e   : > { %v1435_v50 = vmax.f32 %v844_v32, %v846_v40  ;;  %v1499_v51 = vmax.f32 %v1197_v34, %v1199_v41  ;;  %v850_v52 = vadd.f32 %v849_v47, %v2836_v10  ;;  %v1203_v53 = vadd.f32 %v1202_v49, %v2838_v11 }
 0x160   : > { %v1436_v54 = vmax.f32 %v848_v44, %v850_v52  ;;  %v1500_v55 = vmax.f32 %v1201_v46, %v1203_v53  ;;  %v3033_v2 = vmax.f32 %v1435_v50, %v1499_v51 }
 0x162   : > { %v853_v58 = vpop.f32.mrb[44].mxu0  ;;  %v1206_v62 = vpop.f32.mrb[44].mxu1  ;;  %1647 = vrot.lane.b32.xlu0 %v3033_v2, %s2525_s17  ;;  %v3037_v63 = vmax.f32 %v1436_v54, %v1500_v55 }
 0x163   : > { %v854_v1 = vadd.f32 %v853_v58, %v2832_v8  ;;  %v1207_v3 = vadd.f32 %v1206_v62, %v2834_v9  ;;  %v855_v4 = vpop.f32.mrb[45].mxu0  ;;  %v1208_v5 = vpop.f32.mrb[45].mxu1 }
 0x164   : > { %v856_v7 = vadd.f32 %v855_v4, %v2836_v10  ;;  %v1209_v12 = vadd.f32 %v1208_v5, %v2838_v11  ;;  %v857_v14 = vpop.f32.mrb[46].mxu0  ;;  %v1210_v15 = vpop.f32.mrb[46].mxu1  ;;  %1649 = vrot.lane.b32.xlu1 %v3037_v63, %s2525_s17 }
 0x165   : > { %v858_v16 = vadd.f32 %v857_v14, %v2832_v8  ;;  %v1211_v17 = vadd.f32 %v1210_v15, %v2834_v9  ;;  %v859_v18 = vpop.f32.mrb[47].mxu0  ;;  %v1212_v19 = vpop.f32.mrb[47].mxu1 }
 0x166   : > { %v1437_v21 = vmax.f32 %v854_v1, %v856_v7  ;;  %v1501_v22 = vmax.f32 %v1207_v3, %v1209_v12  ;;  %v860_v24 = vadd.f32 %v859_v18, %v2836_v10  ;;  %v1213_v25 = vadd.f32 %v1212_v19, %v2838_v11 }
 0x168   : > { %v1438_v27 = vmax.f32 %v858_v16, %v860_v24  ;;  %v1502_v29 = vmax.f32 %v1211_v17, %v1213_v25  ;;  %v3049_v32 = vmax.f32 %v1437_v21, %v1501_v22 }
 0x16a   : > { %v863_v34 = vpop.f32.mrb[48].mxu0  ;;  %v1216_v37 = vpop.f32.mrb[48].mxu1  ;;  %1651 = vrot.lane.b32.xlu0 %v3049_v32, %s2525_s17  ;;  %v3053_v38 = vmax.f32 %v1438_v27, %v1502_v29 }
 0x16b   : > { %v864_v40 = vadd.f32 %v863_v34, %v2832_v8  ;;  %v1217_v41 = vadd.f32 %v1216_v37, %v2834_v9  ;;  %v865_v42 = vpop.f32.mrb[49].mxu0  ;;  %v1218_v43 = vpop.f32.mrb[49].mxu1 }
 0x16c   : > { %v866_v44 = vadd.f32 %v865_v42, %v2836_v10  ;;  %v1219_v46 = vadd.f32 %v1218_v43, %v2838_v11  ;;  %v867_v47 = vpop.f32.mrb[50].mxu0  ;;  %v1220_v49 = vpop.f32.mrb[50].mxu1  ;;  %1653 = vrot.lane.b32.xlu1 %v3053_v38, %s2525_s17 }
 0x16d   : > { %v868_v50 = vadd.f32 %v867_v47, %v2832_v8  ;;  %v1221_v51 = vadd.f32 %v1220_v49, %v2834_v9  ;;  %v869_v52 = vpop.f32.mrb[51].mxu0  ;;  %v1222_v53 = vpop.f32.mrb[51].mxu1 }
 0x16e   : > { %v1439_v54 = vmax.f32 %v864_v40, %v866_v44  ;;  %v1503_v55 = vmax.f32 %v1217_v41, %v1219_v46  ;;  %v870_v58 = vadd.f32 %v869_v52, %v2836_v10  ;;  %v1223_v62 = vadd.f32 %v1222_v53, %v2838_v11 }
 0x170   : > { %v1440_v1 = vmax.f32 %v868_v50, %v870_v58  ;;  %v1504_v3 = vmax.f32 %v1221_v51, %v1223_v62  ;;  %v3065_v4 = vmax.f32 %v1439_v54, %v1503_v55 }
 0x172   : > { %v873_v5 = vpop.f32.mrb[52].mxu0  ;;  %v1226_v7 = vpop.f32.mrb[52].mxu1  ;;  %1655 = vrot.lane.b32.xlu0 %v3065_v4, %s2525_s17  ;;  %v3069_v12 = vmax.f32 %v1440_v1, %v1504_v3 }
 0x173   : > { %v874_v14 = vadd.f32 %v873_v5, %v2832_v8  ;;  %v1227_v15 = vadd.f32 %v1226_v7, %v2834_v9  ;;  %v875_v16 = vpop.f32.mrb[53].mxu0  ;;  %v1228_v17 = vpop.f32.mrb[53].mxu1 }
 0x174   : > { %v876_v18 = vadd.f32 %v875_v16, %v2836_v10  ;;  %v1229_v19 = vadd.f32 %v1228_v17, %v2838_v11  ;;  %v877_v21 = vpop.f32.mrb[54].mxu0  ;;  %v1230_v22 = vpop.f32.mrb[54].mxu1  ;;  %1657 = vrot.lane.b32.xlu1 %v3069_v12, %s2525_s17 }
 0x175   : > { %v878_v24 = vadd.f32 %v877_v21, %v2832_v8  ;;  %v1231_v25 = vadd.f32 %v1230_v22, %v2834_v9  ;;  %v879_v27 = vpop.f32.mrb[55].mxu0  ;;  %v1232_v29 = vpop.f32.mrb[55].mxu1 }
 0x176   : > { %v1441_v34 = vmax.f32 %v874_v14, %v876_v18  ;;  %v1505_v37 = vmax.f32 %v1227_v15, %v1229_v19  ;;  %v880_v40 = vadd.f32 %v879_v27, %v2836_v10  ;;  %v1233_v41 = vadd.f32 %v1232_v29, %v2838_v11 }
 0x178   : > { %v1442_v42 = vmax.f32 %v878_v24, %v880_v40  ;;  %v1506_v43 = vmax.f32 %v1231_v25, %v1233_v41  ;;  %v3081_v44 = vmax.f32 %v1441_v34, %v1505_v37 }
 0x17a   : > { %v883_v46 = vpop.f32.mrb[56].mxu0  ;;  %v1236_v47 = vpop.f32.mrb[56].mxu1  ;;  %1659 = vrot.lane.b32.xlu0 %v3081_v44, %s2525_s17  ;;  %v3085_v49 = vmax.f32 %v1442_v42, %v1506_v43 }
 0x17b   : > { %v884_v50 = vadd.f32 %v883_v46, %v2832_v8  ;;  %v1237_v51 = vadd.f32 %v1236_v47, %v2834_v9  ;;  %v885_v52 = vpop.f32.mrb[57].mxu0  ;;  %v1238_v53 = vpop.f32.mrb[57].mxu1 }
 0x17c   : > { %v886_v54 = vadd.f32 %v885_v52, %v2836_v10  ;;  %v1239_v55 = vadd.f32 %v1238_v53, %v2838_v11  ;;  %v887_v58 = vpop.f32.mrb[58].mxu0  ;;  %v1240_v62 = vpop.f32.mrb[58].mxu1  ;;  %1661 = vrot.lane.b32.xlu1 %v3085_v49, %s2525_s17 }
 0x17d   : > { %v888_v1 = vadd.f32 %v887_v58, %v2832_v8  ;;  %v1241_v3 = vadd.f32 %v1240_v62, %v2834_v9  ;;  %v889_v5 = vpop.f32.mrb[59].mxu0  ;;  %v1242_v7 = vpop.f32.mrb[59].mxu1 }
 0x17e   : > { %v1443_v14 = vmax.f32 %v884_v50, %v886_v54  ;;  %v1507_v15 = vmax.f32 %v1237_v51, %v1239_v55  ;;  %v890_v16 = vadd.f32 %v889_v5, %v2836_v10  ;;  %v1243_v17 = vadd.f32 %v1242_v7, %v2838_v11 }
 0x180   : > { %v1444_v18 = vmax.f32 %v888_v1, %v890_v16  ;;  %v1508_v19 = vmax.f32 %v1241_v3, %v1243_v17  ;;  %v3097_v21 = vmax.f32 %v1443_v14, %v1507_v15 }
 0x182   : > { %v893_v22 = vpop.f32.mrb[60].mxu0  ;;  %v1246_v24 = vpop.f32.mrb[60].mxu1  ;;  %1663 = vrot.lane.b32.xlu0 %v3097_v21, %s2525_s17  ;;  %v3101_v25 = vmax.f32 %v1444_v18, %v1508_v19 }
 0x183   : > { %v894_v27 = vadd.f32 %v893_v22, %v2832_v8  ;;  %v1247_v29 = vadd.f32 %v1246_v24, %v2834_v9  ;;  %v895_v34 = vpop.f32.mrb[61].mxu0  ;;  %v1248_v37 = vpop.f32.mrb[61].mxu1 }
 0x184   : > { %v896_v40 = vadd.f32 %v895_v34, %v2836_v10  ;;  %v1249_v41 = vadd.f32 %v1248_v37, %v2838_v11  ;;  %v897_v42 = vpop.f32.mrb[62].mxu0  ;;  %v1250_v43 = vpop.f32.mrb[62].mxu1  ;;  %1665 = vrot.lane.b32.xlu1 %v3101_v25, %s2525_s17 }
 0x185   : > { %v898_v46 = vadd.f32 %v897_v42, %v2832_v8  ;;  %v1251_v47 = vadd.f32 %v1250_v43, %v2834_v9  ;;  %v1608_v50 = vpop.permute.xlu0 %1607  ;;  %v899_v51 = vpop.f32.mrb[63].mxu0 }
 0x186   : > { %v1445_v52 = vmax.f32 %v894_v27, %v896_v40  ;;  %v1509_v53 = vmax.f32 %v1247_v29, %v1249_v41  ;;  %v3112_v54 = vmax.f32 %v2853_v33, %v1608_v50  ;;  %v900_v55 = vadd.f32 %v899_v51, %v2836_v10  ;;  %v1252_v58 = vpop.f32.mrb[63].mxu1 }
 0x187   : > { %v1253_v62 = vadd.f32 %v1252_v58, %v2838_v11 }
 0x188   : > { %v1446_v1 = vmax.f32 %v898_v46, %v900_v55  ;;  %1799 = vrot.lane.b32.xlu0 %v3112_v54, %s2526_s7  ;;  %v3118_v3 = vmax.f32 %v1445_v52, %v1509_v53 }
 0x189   : > { %v1510_v5 = vmax.f32 %v1251_v47, %v1253_v62  ;;  %v1610_v7 = vpop.permute.xlu0 %1609 }
 0x18a   : > { %v3121_v14 = vmax.f32 %v2859_v36, %v1610_v7  ;;  %v903_v15 = vpop.f32.mrb[64].mxu0  ;;  %v1256_v33 = vpop.f32.mrb[64].mxu1 }
 0x18b   : > { %v904_v16 = vadd.f32 %v903_v15, %v2832_v8  ;;  %v1257_v17 = vadd.f32 %v1256_v33, %v2834_v9  ;;  %v905_v18 = vpop.f32.mrb[65].mxu0  ;;  %v1258_v19 = vpop.f32.mrb[65].mxu1  ;;  %v3125_v22 = vmax.f32 %v1446_v1, %v1510_v5 }
 0x18c   : > { %v906_v24 = vadd.f32 %v905_v18, %v2836_v10  ;;  %v1259_v27 = vadd.f32 %v1258_v19, %v2838_v11  ;;  %1667 = vrot.lane.b32.xlu0 %v3118_v3, %s2525_s17  ;;  %1801 = vrot.lane.b32.xlu1 %v3121_v14, %s2526_s7  ;;  %v907_v36 = vpop.f32.mrb[66].mxu0  ;;  %v1260_v29 = vpop.f32.mrb[66].mxu1 }
 0x18d   : > { %v908_v34 = vadd.f32 %v907_v36, %v2832_v8  ;;  %v1261_v37 = vadd.f32 %v1260_v29, %v2834_v9  ;;  %v1612_v40 = vpop.permute.xlu1 %1611  ;;  %v909_v41 = vpop.f32.mrb[67].mxu0 }
 0x18e   : > { %v1447_v42 = vmax.f32 %v904_v16, %v906_v24  ;;  %v1511_v43 = vmax.f32 %v1257_v17, %v1259_v27  ;;  %v3136_v46 = vmax.f32 %v2874_v56, %v1612_v40  ;;  %v910_v47 = vadd.f32 %v909_v41, %v2836_v10  ;;  %v1262_v50 = vpop.f32.mrb[67].mxu1 }
 0x18f   : > { %v1263_v51 = vadd.f32 %v1262_v50, %v2838_v11 }
 0x190   : > { %v1448_v52 = vmax.f32 %v908_v34, %v910_v47  ;;  %1803 = vrot.lane.b32.xlu0 %v3136_v46, %s2526_s7  ;;  %1669 = vrot.lane.b32.xlu1 %v3125_v22, %s2525_s17  ;;  %v3144_v53 = vmax.f32 %v1447_v42, %v1511_v43 }
 0x191   : > { %v1512_v55 = vmax.f32 %v1261_v37, %v1263_v51  ;;  %v1614_v58 = vpop.permute.xlu1 %1613 }
 0x192   : > { %v3147_v62 = vmax.f32 %v2880_v59, %v1614_v58  ;;  %v913_v56 = vpop.f32.mrb[68].mxu0  ;;  %v1266_v1 = vpop.f32.mrb[68].mxu1 }
 0x193   : > { %v914_v5 = vadd.f32 %v913_v56, %v2832_v8  ;;  %v1267_v7 = vadd.f32 %v1266_v1, %v2834_v9  ;;  %v915_v15 = vpop.f32.mrb[69].mxu0  ;;  %v1268_v33 = vpop.f32.mrb[69].mxu1  ;;  %v3151_v16 = vmax.f32 %v1448_v52, %v1512_v55 }
 0x194   : > { %1671 = vrot.lane.b32.xlu0 %v3144_v53, %s2525_s17  ;;  %1805 = vrot.lane.b32.xlu1 %v3147_v62, %s2526_s7  ;;  %v916_v17 = vadd.f32 %v915_v15, %v2836_v10  ;;  %v1269_v59 = vadd.f32 %v1268_v33, %v2838_v11  ;;  %v1616_v18 = vpop.permute.xlu0 %1615  ;;  %v917_v19 = vpop.f32.mrb[70].mxu0 }
 0x195   : > { %v3160_v24 = vmax.f32 %v2895_v20, %v1616_v18  ;;  %v918_v27 = vadd.f32 %v917_v19, %v2832_v8  ;;  %v1270_v36 = vpop.f32.mrb[70].mxu1  ;;  %v919_v29 = vpop.f32.mrb[71].mxu0 }
 0x196   : > { %v1449_v34 = vmax.f32 %v914_v5, %v916_v17  ;;  %v1513_v37 = vmax.f32 %v1267_v7, %v1269_v59  ;;  %v1271_v40 = vadd.f32 %v1270_v36, %v2834_v9  ;;  %v920_v41 = vadd.f32 %v919_v29, %v2836_v10  ;;  %v1272_v42 = vpop.f32.mrb[71].mxu1  ;;  %v1618_v47 = vpop.permute.xlu1 %1617 }
 0x197   : > { %v1273_v43 = vadd.f32 %v1272_v42, %v2838_v11  ;;  %v3173_v52 = vmax.f32 %v2901_v23, %v1618_v47 }
 0x198   : > { %v1450_v50 = vmax.f32 %v918_v27, %v920_v41  ;;  %1673 = vrot.lane.b32.xlu1 %v3151_v16, %s2525_s17  ;;  %1807 = vrot.lane.b32.xlu0 %v3160_v24, %s2526_s7  ;;  %v3170_v20 = vmax.f32 %v1449_v34, %v1513_v37 }
 0x199   : > { %v1514_v51 = vmax.f32 %v1271_v40, %v1273_v43 }
 0x19a   : > { %v923_v55 = vpop.f32.mrb[72].mxu0  ;;  %v1276_v58 = vpop.f32.mrb[72].mxu1 }
 0x19b   : > { %v924_v56 = vadd.f32 %v923_v55, %v2832_v8  ;;  %v1277_v1 = vadd.f32 %v1276_v58, %v2834_v9  ;;  %v925_v5 = vpop.f32.mrb[73].mxu0  ;;  %v1278_v7 = vpop.f32.mrb[73].mxu1  ;;  %v3177_v15 = vmax.f32 %v1450_v50, %v1514_v51 }
 0x19c   : > { %1809 = vrot.lane.b32.xlu1 %v3173_v52, %s2526_s7  ;;  %1675 = vrot.lane.b32.xlu0 %v3170_v20, %s2525_s17  ;;  %v926_v33 = vadd.f32 %v925_v5, %v2836_v10  ;;  %v1279_v23 = vadd.f32 %v1278_v7, %v2838_v11  ;;  %v1620_v17 = vpop.permute.xlu0 %1619  ;;  %v927_v59 = vpop.f32.mrb[74].mxu0 }
 0x19d   : > { %v3186_v18 = vmax.f32 %v2916_v45, %v1620_v17  ;;  %v928_v19 = vadd.f32 %v927_v59, %v2832_v8  ;;  %v1280_v27 = vpop.f32.mrb[74].mxu1  ;;  %v929_v36 = vpop.f32.mrb[75].mxu0 }
 0x19e   : > { %v1451_v29 = vmax.f32 %v924_v56, %v926_v33  ;;  %v1515_v34 = vmax.f32 %v1277_v1, %v1279_v23  ;;  %v1281_v37 = vadd.f32 %v1280_v27, %v2834_v9  ;;  %v930_v40 = vadd.f32 %v929_v36, %v2836_v10  ;;  %v1282_v41 = vpop.f32.mrb[75].mxu1  ;;  %v1622_v43 = vpop.permute.xlu1 %1621 }
 0x19f   : > { %v1283_v42 = vadd.f32 %v1282_v41, %v2838_v11  ;;  %v3199_v51 = vmax.f32 %v2922_v48, %v1622_v43 }
 0x1a0   : > { %v1452_v47 = vmax.f32 %v928_v19, %v930_v40  ;;  %1677 = vrot.lane.b32.xlu1 %v3177_v15, %s2525_s17  ;;  %1811 = vrot.lane.b32.xlu0 %v3186_v18, %s2526_s7  ;;  %v3196_v45 = vmax.f32 %v1451_v29, %v1515_v34 }
 0x1a1   : > { %v1516_v50 = vmax.f32 %v1281_v37, %v1283_v42 }
 0x1a2   : > { %v933_v55 = vpop.f32.mrb[76].mxu0  ;;  %v1286_v58 = vpop.f32.mrb[76].mxu1 }
 0x1a3   : > { %v934_v56 = vadd.f32 %v933_v55, %v2832_v8  ;;  %v1287_v1 = vadd.f32 %v1286_v58, %v2834_v9  ;;  %v935_v5 = vpop.f32.mrb[77].mxu0  ;;  %v1288_v7 = vpop.f32.mrb[77].mxu1  ;;  %v3203_v33 = vmax.f32 %v1452_v47, %v1516_v50 }
 0x1a4   : > { %1813 = vrot.lane.b32.xlu1 %v3199_v51, %s2526_s7  ;;  %1679 = vrot.lane.b32.xlu0 %v3196_v45, %s2525_s17  ;;  %v936_v23 = vadd.f32 %v935_v5, %v2836_v10  ;;  %v1289_v48 = vadd.f32 %v1288_v7, %v2838_v11  ;;  %v1624_v17 = vpop.permute.xlu0 %1623  ;;  %v937_v59 = vpop.f32.mrb[78].mxu0 }
 0x1a5   : > { %v3212_v19 = vmax.f32 %v2937_v6, %v1624_v17  ;;  %v938_v27 = vadd.f32 %v937_v59, %v2832_v8  ;;  %v1290_v36 = vpop.f32.mrb[78].mxu1  ;;  %v939_v29 = vpop.f32.mrb[79].mxu0 }
 0x1a6   : > { %v1453_v34 = vmax.f32 %v934_v56, %v936_v23  ;;  %v1517_v37 = vmax.f32 %v1287_v1, %v1289_v48  ;;  %v1291_v40 = vadd.f32 %v1290_v36, %v2834_v9  ;;  %v940_v41 = vadd.f32 %v939_v29, %v2836_v10  ;;  %v1292_v42 = vpop.f32.mrb[79].mxu1  ;;  %v1626_v47 = vpop.permute.xlu1 %1625 }
 0x1a7   : > { %v1293_v43 = vadd.f32 %v1292_v42, %v2838_v11  ;;  %v3225_v58 = vmax.f32 %v2941_v13, %v1626_v47 }
 0x1a8   : > { %v1454_v50 = vmax.f32 %v938_v27, %v940_v41  ;;  %1681 = vrot.lane.b32.xlu1 %v3203_v33, %s2525_s17  ;;  %1815 = vrot.lane.b32.xlu0 %v3212_v19, %s2526_s7  ;;  %v3222_v6 = vmax.f32 %v1453_v34, %v1517_v37 }
 0x1a9   : > { %v1518_v55 = vmax.f32 %v1291_v40, %v1293_v43 }
 0x1aa   : > { %v943_v56 = vpop.f32.mrb[80].mxu0  ;;  %v1296_v1 = vpop.f32.mrb[80].mxu1 }
 0x1ab   : > { %v944_v5 = vadd.f32 %v943_v56, %v2832_v8  ;;  %v1297_v7 = vadd.f32 %v1296_v1, %v2834_v9  ;;  %v945_v23 = vpop.f32.mrb[81].mxu0  ;;  %v1298_v48 = vpop.f32.mrb[81].mxu1  ;;  %v3229_v17 = vmax.f32 %v1454_v50, %v1518_v55 }
 0x1ac   : > { %1817 = vrot.lane.b32.xlu1 %v3225_v58, %s2526_s7  ;;  %1683 = vrot.lane.b32.xlu0 %v3222_v6, %s2525_s17  ;;  %v946_v59 = vadd.f32 %v945_v23, %v2836_v10  ;;  %v1299_v13 = vadd.f32 %v1298_v48, %v2838_v11  ;;  %v1628_v27 = vpop.permute.xlu0 %1627  ;;  %v947_v36 = vpop.f32.mrb[82].mxu0 }
 0x1ad   : > { %v3238_v29 = vmax.f32 %v2953_v35, %v1628_v27  ;;  %v948_v34 = vadd.f32 %v947_v36, %v2832_v8  ;;  %v1300_v37 = vpop.f32.mrb[82].mxu1  ;;  %v949_v40 = vpop.f32.mrb[83].mxu0 }
 0x1ae   : > { %v1455_v41 = vmax.f32 %v944_v5, %v946_v59  ;;  %v1519_v42 = vmax.f32 %v1297_v7, %v1299_v13  ;;  %v1301_v43 = vadd.f32 %v1300_v37, %v2834_v9  ;;  %v950_v47 = vadd.f32 %v949_v40, %v2836_v10  ;;  %v1302_v50 = vpop.f32.mrb[83].mxu1  ;;  %v1630_v56 = vpop.permute.xlu1 %1629 }
 0x1af   : > { %v1303_v55 = vadd.f32 %v1302_v50, %v2838_v11  ;;  %v3251_v5 = vmax.f32 %v2957_v39, %v1630_v56 }
 0x1b0   : > { %v1456_v1 = vmax.f32 %v948_v34, %v950_v47  ;;  %1685 = vrot.lane.b32.xlu1 %v3229_v17, %s2525_s17  ;;  %1819 = vrot.lane.b32.xlu0 %v3238_v29, %s2526_s7  ;;  %v3248_v35 = vmax.f32 %v1455_v41, %v1519_v42 }
 0x1b1   : > { %v1520_v23 = vmax.f32 %v1301_v43, %v1303_v55 }
 0x1b2   : > { %v953_v7 = vpop.f32.mrb[84].mxu0  ;;  %v1306_v48 = vpop.f32.mrb[84].mxu1 }
 0x1b3   : > { %v954_v59 = vadd.f32 %v953_v7, %v2832_v8  ;;  %v1307_v13 = vadd.f32 %v1306_v48, %v2834_v9  ;;  %v955_v27 = vpop.f32.mrb[85].mxu0  ;;  %v1308_v36 = vpop.f32.mrb[85].mxu1  ;;  %v3255_v34 = vmax.f32 %v1456_v1, %v1520_v23 }
 0x1b4   : > { %1821 = vrot.lane.b32.xlu1 %v3251_v5, %s2526_s7  ;;  %1687 = vrot.lane.b32.xlu0 %v3248_v35, %s2525_s17  ;;  %v956_v37 = vadd.f32 %v955_v27, %v2836_v10  ;;  %v1309_v39 = vadd.f32 %v1308_v36, %v2838_v11  ;;  %v1632_v40 = vpop.permute.xlu0 %1631  ;;  %v957_v41 = vpop.f32.mrb[86].mxu0 }
 0x1b5   : > { %v3264_v42 = vmax.f32 %v2969_v61, %v1632_v40  ;;  %v958_v43 = vadd.f32 %v957_v41, %v2832_v8  ;;  %v1310_v47 = vpop.f32.mrb[86].mxu1  ;;  %v959_v50 = vpop.f32.mrb[87].mxu0 }
 0x1b6   : > { %v1457_v55 = vmax.f32 %v954_v59, %v956_v37  ;;  %v1521_v56 = vmax.f32 %v1307_v13, %v1309_v39  ;;  %v1311_v1 = vadd.f32 %v1310_v47, %v2834_v9  ;;  %v960_v23 = vadd.f32 %v959_v50, %v2836_v10  ;;  %v1312_v7 = vpop.f32.mrb[87].mxu1  ;;  %v1634_v27 = vpop.permute.xlu1 %1633 }
 0x1b7   : > { %v1313_v48 = vadd.f32 %v1312_v7, %v2838_v11  ;;  %v3277_v59 = vmax.f32 %v2973_v0, %v1634_v27 }
 0x1b8   : > { %v1458_v36 = vmax.f32 %v958_v43, %v960_v23  ;;  %1689 = vrot.lane.b32.xlu1 %v3255_v34, %s2525_s17  ;;  %1823 = vrot.lane.b32.xlu0 %v3264_v42, %s2526_s7  ;;  %v3274_v61 = vmax.f32 %v1457_v55, %v1521_v56 }
 0x1b9   : > { %v1522_v40 = vmax.f32 %v1311_v1, %v1313_v48  ;;  %3907 = vst [vmem:[#allocation6_spill] sm:$0xff] %v3277_v59 }
 0x1ba   : > { %3906 = vst [vmem:[#allocation5_spill] sm:$0xff] %v3274_v61  ;;  %v963_v13 = vpop.f32.mrb[88].mxu0  ;;  %v1316_v37 = vpop.f32.mrb[88].mxu1 }
 0x1bb   : > { %v964_v39 = vadd.f32 %v963_v13, %v2832_v8  ;;  %v1317_v41 = vadd.f32 %v1316_v37, %v2834_v9  ;;  %v965_v47 = vpop.f32.mrb[89].mxu0  ;;  %v1318_v43 = vpop.f32.mrb[89].mxu1  ;;  %v3281_v50 = vmax.f32 %v1458_v36, %v1522_v40 }
 0x1bc   : > { %1825 = vrot.lane.b32.xlu1 %v3277_v59, %s2526_s7  ;;  %1691 = vrot.lane.b32.xlu0 %v3274_v61, %s2525_s17  ;;  %v966_v55 = vadd.f32 %v965_v47, %v2836_v10  ;;  %v1319_v0 = vadd.f32 %v1318_v43, %v2838_v11  ;;  %v1636_v56 = vpop.permute.xlu0 %1635  ;;  %v967_v1 = vpop.f32.mrb[90].mxu0 }
 0x1bd   : > { %v3290_v23 = vmax.f32 %v2985_v28, %v1636_v56  ;;  %v968_v7 = vadd.f32 %v967_v1, %v2832_v8  ;;  %v1320_v48 = vpop.f32.mrb[90].mxu1  ;;  %v969_v27 = vpop.f32.mrb[91].mxu0 }
 0x1be   : > { %v1459_v36 = vmax.f32 %v964_v39, %v966_v55  ;;  %v1523_v40 = vmax.f32 %v1317_v41, %v1319_v0  ;;  %v1321_v13 = vadd.f32 %v1320_v48, %v2834_v9  ;;  %v970_v37 = vadd.f32 %v969_v27, %v2836_v10  ;;  %v1322_v61 = vpop.f32.mrb[91].mxu1  ;;  %v1638_v59 = vpop.permute.xlu1 %1637 }
 0x1bf   : > { %v1323_v47 = vadd.f32 %v1322_v61, %v2838_v11  ;;  %v3303_v39 = vmax.f32 %v2989_v31, %v1638_v59 }
 0x1c0   : > { %v1460_v43 = vmax.f32 %v968_v7, %v970_v37  ;;  %1693 = vrot.lane.b32.xlu1 %v3281_v50, %s2525_s17  ;;  %1827 = vrot.lane.b32.xlu0 %v3290_v23, %s2526_s7  ;;  %v3300_v28 = vmax.f32 %v1459_v36, %v1523_v40 }
 0x1c1   : > { %v1524_v56 = vmax.f32 %v1321_v13, %v1323_v47  ;;  %3909 = vst [vmem:[#allocation8_spill] sm:$0xff] %v3303_v39 }
 0x1c2   : > { %3908 = vst [vmem:[#allocation7_spill] sm:$0xff] %v3300_v28  ;;  %v973_v41 = vpop.f32.mrb[92].mxu0  ;;  %v1326_v55 = vpop.f32.mrb[92].mxu1 }
 0x1c3   : > { %v974_v0 = vadd.f32 %v973_v41, %v2832_v8  ;;  %v1327_v61 = vadd.f32 %v1326_v55, %v2834_v9  ;;  %v975_v1 = vpop.f32.mrb[93].mxu0  ;;  %v1328_v7 = vpop.f32.mrb[93].mxu1  ;;  %v3307_v48 = vmax.f32 %v1460_v43, %v1524_v56 }
 0x1c4   : > { %1829 = vrot.lane.b32.xlu1 %v3303_v39, %s2526_s7  ;;  %1695 = vrot.lane.b32.xlu0 %v3300_v28, %s2525_s17  ;;  %v976_v27 = vadd.f32 %v975_v1, %v2836_v10  ;;  %v1329_v31 = vadd.f32 %v1328_v7, %v2838_v11  ;;  %v1640_v59 = vpop.permute.xlu0 %1639  ;;  %v977_v36 = vpop.f32.mrb[94].mxu0 }
 0x1c5   : > { %v3316_v40 = vmax.f32 %v3001_v57, %v1640_v59  ;;  %v978_v13 = vadd.f32 %v977_v36, %v2832_v8  ;;  %v1330_v37 = vpop.f32.mrb[94].mxu1  ;;  %v979_v47 = vpop.f32.mrb[95].mxu0 }
 0x1c6   : > { %v1461_v43 = vmax.f32 %v974_v0, %v976_v27  ;;  %v1525_v56 = vmax.f32 %v1327_v61, %v1329_v31  ;;  %v1331_v41 = vadd.f32 %v1330_v37, %v2834_v9  ;;  %v980_v55 = vadd.f32 %v979_v47, %v2836_v10  ;;  %v1332_v28 = vpop.f32.mrb[95].mxu1  ;;  %v1642_v39 = vpop.permute.xlu1 %1641 }
 0x1c7   : > { %v1333_v1 = vadd.f32 %v1332_v28, %v2838_v11  ;;  %v3329_v0 = vmax.f32 %v3005_v60, %v1642_v39 }
 0x1c8   : > { %v1462_v7 = vmax.f32 %v978_v13, %v980_v55  ;;  %1697 = vrot.lane.b32.xlu1 %v3307_v48, %s2525_s17  ;;  %1831 = vrot.lane.b32.xlu0 %v3316_v40, %s2526_s7  ;;  %v3326_v57 = vmax.f32 %v1461_v43, %v1525_v56 }
 0x1c9   : > { %v1526_v59 = vmax.f32 %v1331_v41, %v1333_v1  ;;  %3911 = vst [vmem:[#allocation10_spill] sm:$0xff] %v3329_v0 }
 0x1ca   : > { %3910 = vst [vmem:[#allocation9_spill] sm:$0xff] %v3326_v57  ;;  %v983_v61 = vpop.f32.mrb[96].mxu0  ;;  %v1336_v27 = vpop.f32.mrb[96].mxu1 }
 0x1cb   : > { %v984_v31 = vadd.f32 %v983_v61, %v2832_v8  ;;  %v1337_v28 = vadd.f32 %v1336_v27, %v2834_v9  ;;  %v985_v36 = vpop.f32.mrb[97].mxu0  ;;  %v1338_v13 = vpop.f32.mrb[97].mxu1  ;;  %v3333_v37 = vmax.f32 %v1462_v7, %v1526_v59 }
 0x1cc   : > { %1833 = vrot.lane.b32.xlu1 %v3329_v0, %s2526_s7  ;;  %1699 = vrot.lane.b32.xlu0 %v3326_v57, %s2525_s17  ;;  %v986_v47 = vadd.f32 %v985_v36, %v2836_v10  ;;  %v1339_v60 = vadd.f32 %v1338_v13, %v2838_v11  ;;  %v1644_v39 = vpop.permute.xlu0 %1643  ;;  %v987_v43 = vpop.f32.mrb[98].mxu0 }
 0x1cd   : > { %v3342_v56 = vmax.f32 %v3017_v26, %v1644_v39  ;;  %v988_v41 = vadd.f32 %v987_v43, %v2832_v8  ;;  %v1340_v55 = vpop.f32.mrb[98].mxu1  ;;  %v989_v1 = vpop.f32.mrb[99].mxu0 }
 0x1ce   : > { %v1463_v7 = vmax.f32 %v984_v31, %v986_v47  ;;  %v1527_v59 = vmax.f32 %v1337_v28, %v1339_v60  ;;  %v1341_v61 = vadd.f32 %v1340_v55, %v2834_v9  ;;  %v990_v27 = vadd.f32 %v989_v1, %v2836_v10  ;;  %v1342_v57 = vpop.f32.mrb[99].mxu1  ;;  %v1646_v0 = vpop.permute.xlu1 %1645 }
 0x1cf   : > { %v1343_v36 = vadd.f32 %v1342_v57, %v2838_v11  ;;  %v3355_v31 = vmax.f32 %v3021_v30, %v1646_v0 }
 0x1d0   : > { %v1464_v13 = vmax.f32 %v988_v41, %v990_v27  ;;  %1701 = vrot.lane.b32.xlu1 %v3333_v37, %s2525_s17  ;;  %1835 = vrot.lane.b32.xlu0 %v3342_v56, %s2526_s7  ;;  %v3352_v26 = vmax.f32 %v1463_v7, %v1527_v59 }
 0x1d1   : > { %v1528_v39 = vmax.f32 %v1341_v61, %v1343_v36  ;;  %3913 = vst [vmem:[#allocation12_spill] sm:$0xff] %v3355_v31 }
 0x1d2   : > { %3912 = vst [vmem:[#allocation11_spill] sm:$0xff] %v3352_v26  ;;  %v993_v28 = vpop.f32.mrb[100].mxu0  ;;  %v1346_v47 = vpop.f32.mrb[100].mxu1 }
 0x1d3   : > { %v994_v60 = vadd.f32 %v993_v28, %v2832_v8  ;;  %v1347_v57 = vadd.f32 %v1346_v47, %v2834_v9  ;;  %v995_v43 = vpop.f32.mrb[101].mxu0  ;;  %v1348_v41 = vpop.f32.mrb[101].mxu1  ;;  %v3359_v55 = vmax.f32 %v1464_v13, %v1528_v39 }
 0x1d4   : > { %1837 = vrot.lane.b32.xlu1 %v3355_v31, %s2526_s7  ;;  %1703 = vrot.lane.b32.xlu0 %v3352_v26, %s2525_s17  ;;  %v996_v1 = vadd.f32 %v995_v43, %v2836_v10  ;;  %v1349_v30 = vadd.f32 %v1348_v41, %v2838_v11  ;;  %v1648_v0 = vpop.permute.xlu0 %1647  ;;  %v997_v7 = vpop.f32.mrb[102].mxu0 }
 0x1d5   : > { %v3368_v59 = vmax.f32 %v3033_v2, %v1648_v0  ;;  %v998_v61 = vadd.f32 %v997_v7, %v2832_v8  ;;  %v1350_v27 = vpop.f32.mrb[102].mxu1  ;;  %v999_v36 = vpop.f32.mrb[103].mxu0 }
 0x1d6   : > { %v1465_v13 = vmax.f32 %v994_v60, %v996_v1  ;;  %v1529_v39 = vmax.f32 %v1347_v57, %v1349_v30  ;;  %v1351_v28 = vadd.f32 %v1350_v27, %v2834_v9  ;;  %v1000_v47 = vadd.f32 %v999_v36, %v2836_v10  ;;  %v1352_v26 = vpop.f32.mrb[103].mxu1  ;;  %v1650_v31 = vpop.permute.xlu1 %1649 }
 0x1d7   : > { %v1353_v43 = vadd.f32 %v1352_v26, %v2838_v11  ;;  %v3381_v60 = vmax.f32 %v3037_v63, %v1650_v31 }
 0x1d8   : > { %v1466_v41 = vmax.f32 %v998_v61, %v1000_v47  ;;  %1705 = vrot.lane.b32.xlu1 %v3359_v55, %s2525_s17  ;;  %1839 = vrot.lane.b32.xlu0 %v3368_v59, %s2526_s7  ;;  %v3378_v2 = vmax.f32 %v1465_v13, %v1529_v39 }
 0x1d9   : > { %v1530_v0 = vmax.f32 %v1351_v28, %v1353_v43  ;;  %3915 = vst [vmem:[#allocation14_spill] sm:$0xff] %v3381_v60 }
 0x1da   : > { %3914 = vst [vmem:[#allocation13_spill] sm:$0xff] %v3378_v2  ;;  %v1003_v57 = vpop.f32.mrb[104].mxu0  ;;  %v1356_v1 = vpop.f32.mrb[104].mxu1 }
 0x1db   : > { %v1004_v30 = vadd.f32 %v1003_v57, %v2832_v8  ;;  %v1357_v26 = vadd.f32 %v1356_v1, %v2834_v9  ;;  %v1005_v7 = vpop.f32.mrb[105].mxu0  ;;  %v1358_v61 = vpop.f32.mrb[105].mxu1  ;;  %v3385_v27 = vmax.f32 %v1466_v41, %v1530_v0 }
 0x1dc   : > { %1841 = vrot.lane.b32.xlu1 %v3381_v60, %s2526_s7  ;;  %1707 = vrot.lane.b32.xlu0 %v3378_v2, %s2525_s17  ;;  %v1006_v36 = vadd.f32 %v1005_v7, %v2836_v10  ;;  %v1359_v63 = vadd.f32 %v1358_v61, %v2838_v11  ;;  %v1652_v31 = vpop.permute.xlu0 %1651  ;;  %v1007_v13 = vpop.f32.mrb[106].mxu0 }
 0x1dd   : > { %v3394_v39 = vmax.f32 %v3049_v32, %v1652_v31  ;;  %v1008_v28 = vadd.f32 %v1007_v13, %v2832_v8  ;;  %v1360_v47 = vpop.f32.mrb[106].mxu1  ;;  %v1009_v43 = vpop.f32.mrb[107].mxu0 }
 0x1de   : > { %v1467_v41 = vmax.f32 %v1004_v30, %v1006_v36  ;;  %v1531_v0 = vmax.f32 %v1357_v26, %v1359_v63  ;;  %v1361_v57 = vadd.f32 %v1360_v47, %v2834_v9  ;;  %v1010_v1 = vadd.f32 %v1009_v43, %v2836_v10  ;;  %v1362_v2 = vpop.f32.mrb[107].mxu1  ;;  %v1654_v60 = vpop.permute.xlu1 %1653 }
 0x1df   : > { %v1363_v7 = vadd.f32 %v1362_v2, %v2838_v11  ;;  %v3407_v30 = vmax.f32 %v3053_v38, %v1654_v60 }
 0x1e0   : > { %v1468_v61 = vmax.f32 %v1008_v28, %v1010_v1  ;;  %1709 = vrot.lane.b32.xlu1 %v3385_v27, %s2525_s17  ;;  %1843 = vrot.lane.b32.xlu0 %v3394_v39, %s2526_s7  ;;  %v3404_v32 = vmax.f32 %v1467_v41, %v1531_v0 }
 0x1e1   : > { %v1532_v31 = vmax.f32 %v1361_v57, %v1363_v7  ;;  %3917 = vst [vmem:[#allocation16_spill] sm:$0xff] %v3407_v30 }
 0x1e2   : > { %3916 = vst [vmem:[#allocation15_spill] sm:$0xff] %v3404_v32  ;;  %v1013_v26 = vpop.f32.mrb[108].mxu0  ;;  %v1366_v36 = vpop.f32.mrb[108].mxu1 }
 0x1e3   : > { %v1014_v63 = vadd.f32 %v1013_v26, %v2832_v8  ;;  %v1367_v2 = vadd.f32 %v1366_v36, %v2834_v9  ;;  %v1015_v13 = vpop.f32.mrb[109].mxu0  ;;  %v1368_v28 = vpop.f32.mrb[109].mxu1  ;;  %v3411_v47 = vmax.f32 %v1468_v61, %v1532_v31 }
 0x1e4   : > { %1845 = vrot.lane.b32.xlu1 %v3407_v30, %s2526_s7  ;;  %1711 = vrot.lane.b32.xlu0 %v3404_v32, %s2525_s17  ;;  %v1016_v43 = vadd.f32 %v1015_v13, %v2836_v10  ;;  %v1369_v38 = vadd.f32 %v1368_v28, %v2838_v11  ;;  %v1656_v60 = vpop.permute.xlu0 %1655  ;;  %v1017_v41 = vpop.f32.mrb[110].mxu0 }
 0x1e5   : > { %v3420_v0 = vmax.f32 %v3065_v4, %v1656_v60  ;;  %v1018_v57 = vadd.f32 %v1017_v41, %v2832_v8  ;;  %v1370_v1 = vpop.f32.mrb[110].mxu1  ;;  %v1019_v7 = vpop.f32.mrb[111].mxu0 }
 0x1e6   : > { %v1469_v61 = vmax.f32 %v1014_v63, %v1016_v43  ;;  %v1533_v31 = vmax.f32 %v1367_v2, %v1369_v38  ;;  %v1371_v26 = vadd.f32 %v1370_v1, %v2834_v9  ;;  %v1020_v36 = vadd.f32 %v1019_v7, %v2836_v10  ;;  %v1372_v32 = vpop.f32.mrb[111].mxu1  ;;  %v1658_v30 = vpop.permute.xlu1 %1657 }
 0x1e7   : > { %v1373_v13 = vadd.f32 %v1372_v32, %v2838_v11  ;;  %v3433_v63 = vmax.f32 %v3069_v12, %v1658_v30 }
 0x1e8   : > { %v1470_v28 = vmax.f32 %v1018_v57, %v1020_v36  ;;  %1713 = vrot.lane.b32.xlu1 %v3411_v47, %s2525_s17  ;;  %1847 = vrot.lane.b32.xlu0 %v3420_v0, %s2526_s7  ;;  %v3430_v4 = vmax.f32 %v1469_v61, %v1533_v31 }
 0x1e9   : > { %v1534_v60 = vmax.f32 %v1371_v26, %v1373_v13  ;;  %3919 = vst [vmem:[#allocation18_spill] sm:$0xff] %v3433_v63 }
 0x1ea   : > { %3918 = vst [vmem:[#allocation17_spill] sm:$0xff] %v3430_v4  ;;  %v1023_v2 = vpop.f32.mrb[112].mxu0  ;;  %v1376_v43 = vpop.f32.mrb[112].mxu1 }
 0x1eb   : > { %v1024_v38 = vadd.f32 %v1023_v2, %v2832_v8  ;;  %v1377_v32 = vadd.f32 %v1376_v43, %v2834_v9  ;;  %v1025_v41 = vpop.f32.mrb[113].mxu0  ;;  %v1378_v57 = vpop.f32.mrb[113].mxu1  ;;  %v3437_v1 = vmax.f32 %v1470_v28, %v1534_v60 }
 0x1ec   : > { %1849 = vrot.lane.b32.xlu1 %v3433_v63, %s2526_s7  ;;  %1715 = vrot.lane.b32.xlu0 %v3430_v4, %s2525_s17  ;;  %v1026_v7 = vadd.f32 %v1025_v41, %v2836_v10  ;;  %v1379_v12 = vadd.f32 %v1378_v57, %v2838_v11  ;;  %v1660_v30 = vpop.permute.xlu0 %1659  ;;  %v1027_v61 = vpop.f32.mrb[114].mxu0 }
 0x1ed   : > { %v3446_v31 = vmax.f32 %v3081_v44, %v1660_v30  ;;  %v1028_v26 = vadd.f32 %v1027_v61, %v2832_v8  ;;  %v1380_v36 = vpop.f32.mrb[114].mxu1  ;;  %v1029_v13 = vpop.f32.mrb[115].mxu0 }
 0x1ee   : > { %v1471_v28 = vmax.f32 %v1024_v38, %v1026_v7  ;;  %v1535_v60 = vmax.f32 %v1377_v32, %v1379_v12  ;;  %v1381_v2 = vadd.f32 %v1380_v36, %v2834_v9  ;;  %v1030_v43 = vadd.f32 %v1029_v13, %v2836_v10  ;;  %v1382_v4 = vpop.f32.mrb[115].mxu1  ;;  %v1662_v63 = vpop.permute.xlu1 %1661 }
 0x1ef   : > { %v1383_v41 = vadd.f32 %v1382_v4, %v2838_v11  ;;  %v3459_v38 = vmax.f32 %v3085_v49, %v1662_v63 }
 0x1f0   : > { %v1472_v57 = vmax.f32 %v1028_v26, %v1030_v43  ;;  %1717 = vrot.lane.b32.xlu1 %v3437_v1, %s2525_s17  ;;  %1851 = vrot.lane.b32.xlu0 %v3446_v31, %s2526_s7  ;;  %v3456_v44 = vmax.f32 %v1471_v28, %v1535_v60 }
 0x1f1   : > { %v1536_v30 = vmax.f32 %v1381_v2, %v1383_v41  ;;  %3921 = vst [vmem:[#allocation20_spill] sm:$0xff] %v3459_v38 }
 0x1f2   : > { %3920 = vst [vmem:[#allocation19_spill] sm:$0xff] %v3456_v44  ;;  %v1033_v32 = vpop.f32.mrb[116].mxu0  ;;  %v1386_v7 = vpop.f32.mrb[116].mxu1 }
 0x1f3   : > { %v1034_v12 = vadd.f32 %v1033_v32, %v2832_v8  ;;  %v1387_v4 = vadd.f32 %v1386_v7, %v2834_v9  ;;  %v1035_v61 = vpop.f32.mrb[117].mxu0  ;;  %v1388_v26 = vpop.f32.mrb[117].mxu1  ;;  %v3463_v36 = vmax.f32 %v1472_v57, %v1536_v30 }
 0x1f4   : > { %1853 = vrot.lane.b32.xlu1 %v3459_v38, %s2526_s7  ;;  %1719 = vrot.lane.b32.xlu0 %v3456_v44, %s2525_s17  ;;  %v1036_v49 = vadd.f32 %v1035_v61, %v2836_v10  ;;  %v1389_v63 = vadd.f32 %v1388_v26, %v2838_v11  ;;  %v1664_v13 = vpop.permute.xlu0 %1663  ;;  %v1037_v28 = vpop.f32.mrb[118].mxu0 }
 0x1f5   : > { %v3472_v60 = vmax.f32 %v3097_v21, %v1664_v13  ;;  %v1038_v2 = vadd.f32 %v1037_v28, %v2832_v8  ;;  %v1390_v43 = vpop.f32.mrb[118].mxu1  ;;  %v1039_v41 = vpop.f32.mrb[119].mxu0 }
 0x1f6   : > { %v1473_v57 = vmax.f32 %v1034_v12, %v1036_v49  ;;  %v1537_v30 = vmax.f32 %v1387_v4, %v1389_v63  ;;  %v1391_v32 = vadd.f32 %v1390_v43, %v2834_v9  ;;  %v1040_v7 = vadd.f32 %v1039_v41, %v2836_v10  ;;  %v1392_v44 = vpop.f32.mrb[119].mxu1  ;;  %v1666_v26 = vpop.permute.xlu1 %1665 }
 0x1f7   : > { %v1393_v61 = vadd.f32 %v1392_v44, %v2838_v11  ;;  %v3488_v4 = vmax.f32 %v3101_v25, %v1666_v26 }
 0x1f8   : > { %v1474_v38 = vmax.f32 %v1038_v2, %v1040_v7  ;;  %1721 = vrot.lane.b32.xlu1 %v3463_v36, %s2525_s17  ;;  %1855 = vrot.lane.b32.xlu0 %v3472_v60, %s2526_s7  ;;  %v3483_v21 = vmax.f32 %v1473_v57, %v1537_v30 }
 0x1f9   : > { %v1538_v12 = vmax.f32 %v1391_v32, %v1393_v61 }
 0x1fa   : > { %3922 = vst [vmem:[#allocation21_spill] sm:$0xff] %v3483_v21  ;;  %v1800_v49 = vpop.permute.xlu0 %1799  ;;  %v1043_v63 = vpop.f32.mrb[120].mxu0 }
 0x1fb   : > { %v1927_v44 = vmax.f32 %v3112_v54, %v1800_v49  ;;  %v1044_v13 = vadd.f32 %v1043_v63, %v2832_v8  ;;  %v1396_v28 = vpop.f32.mrb[120].mxu1  ;;  %v1045_v2 = vpop.f32.mrb[121].mxu0  ;;  %v3492_v43 = vmax.f32 %v1474_v38, %v1538_v12 }
 0x1fc   : > { %v1397_v41 = vadd.f32 %v1396_v28, %v2834_v9  ;;  %1857 = vrot.lane.b32.xlu1 %v3488_v4, %s2526_s7  ;;  %1723 = vrot.lane.b32.xlu0 %v3483_v21, %s2525_s17  ;;  %v1046_v25 = vadd.f32 %v1045_v2, %v2836_v10  ;;  %v1398_v57 = vpop.f32.mrb[121].mxu1  ;;  %v1047_v30 = vpop.f32.mrb[122].mxu0 }
 0x1fd   : > { %v1991_v32 = vmax.f32 %v1927_v44, 0.0  ;;  %v1399_v54 = vadd.f32 %v1398_v57, %v2838_v11  ;;  %v1048_v7 = vadd.f32 %v1047_v30, %v2832_v8  ;;  %v1400_v61 = vpop.f32.mrb[122].mxu1  ;;  %v1049_v38 = vpop.f32.mrb[123].mxu0 }
 0x1fe   : > { %v1475_v26 = vmax.f32 %v1044_v13, %v1046_v25  ;;  %v1401_v12 = vadd.f32 %v1400_v61, %v2834_v9  ;;  %v1802_v49 = vpop.permute.xlu1 %1801  ;;  %v1668_v63 = vpop.permute.xlu0 %1667  ;;  %v1050_v28 = vadd.f32 %v1049_v38, %v2836_v10 }
 0x1ff   : > { %2055 = vst [vmem:[%s3504_s24] sm:$0xff] %v1991_v32  ;;  %v1539_v2 = vmax.f32 %v1397_v41, %v1399_v54  ;;  %v1928_v44 = vmax.f32 %v3121_v14, %v1802_v49  ;;  %v3509_v57 = vmax.f32 %v3118_v3, %v1668_v63  ;;  %v1402_v30 = vpop.f32.mrb[123].mxu1 }
 0x200   : > { %v1476_v21 = vmax.f32 %v1048_v7, %v1050_v28  ;;  %v1403_v13 = vadd.f32 %v1402_v30, %v2838_v11  ;;  %1725 = vrot.lane.b32.xlu1 %v3492_v43, %s2525_s17 }
 0x201   : > { %v1992_v25 = vmax.f32 %v1928_v44, 0.0  ;;  %1859 = vrot.lane.b32.xlu0 %v3509_v57, %s2526_s7  ;;  %v3516_v61 = vmax.f32 %v1475_v26, %v1539_v2 }
 0x202   : > { %v1540_v32 = vmax.f32 %v1401_v12, %v1403_v13  ;;  %v1670_v41 = vpop.permute.xlu1 %1669  ;;  %v1804_v54 = vpop.permute.xlu0 %1803 }
 0x203   : > { %3923 = vst [vmem:[#allocation22_spill] sm:$0xff] %v3516_v61  ;;  %2056 = vst [vmem:[%s3504_s24 + $0x8] sm:$0xff] %v1992_v25  ;;  %v3520_v3 = vmax.f32 %v3125_v22, %v1670_v41  ;;  %v1929_v14 = vmax.f32 %v3136_v46, %v1804_v54  ;;  %v1053_v7 = vpop.f32.mrb[124].mxu0  ;;  %v1406_v38 = vpop.f32.mrb[124].mxu1 }
 0x204   : > { %v1054_v49 = vadd.f32 %v1053_v7, %v2832_v8  ;;  %v1407_v63 = vadd.f32 %v1406_v38, %v2834_v9  ;;  %v1055_v28 = vpop.f32.mrb[125].mxu0  ;;  %v1408_v44 = vpop.f32.mrb[125].mxu1  ;;  %v3525_v26 = vmax.f32 %v1476_v21, %v1540_v32 }
 0x205   : > { %v1993_v12 = vmax.f32 %v1929_v14, 0.0  ;;  %v1056_v2 = vadd.f32 %v1055_v28, %v2836_v10  ;;  %v1409_v30 = vadd.f32 %v1408_v44, %v2838_v11  ;;  %1861 = vrot.lane.b32.xlu1 %v3520_v3, %s2526_s7  ;;  %1727 = vrot.lane.b32.xlu0 %v3516_v61, %s2525_s17  ;;  %v1057_v22 = vpop.f32.mrb[126].mxu0  ;;  %v1410_v46 = vpop.f32.mrb[126].mxu1 }
 0x206   : > { %v1058_v13 = vadd.f32 %v1057_v22, %v2832_v8  ;;  %v1411_v25 = vadd.f32 %v1410_v46, %v2834_v9  ;;  %v1806_v41 = vpop.permute.xlu1 %1805  ;;  %v1672_v21 = vpop.permute.xlu0 %1671 }
 0x207   : > { %2057 = vst [vmem:[%s3504_s24 + $0x10] sm:$0xff] %v1993_v12  ;;  %v1477_v32 = vmax.f32 %v1054_v49, %v1056_v2  ;;  %v1541_v54 = vmax.f32 %v1407_v63, %v1409_v30  ;;  %v1930_v14 = vmax.f32 %v3147_v62, %v1806_v41  ;;  %v3538_v7 = vmax.f32 %v3144_v53, %v1672_v21  ;;  %v1059_v38 = vpop.f32.mrb[127].mxu0  ;;  %v1412_v28 = vpop.f32.mrb[127].mxu1 }
 0x208   : > { %v1060_v44 = vadd.f32 %v1059_v38, %v2836_v10  ;;  %v1413_v61 = vadd.f32 %v1412_v28, %v2838_v11 }
 0x209   : > { %v1994_v8 = vmax.f32 %v1930_v14, 0.0  ;;  %1729 = vrot.lane.b32.xlu1 %v3525_v26, %s2525_s17  ;;  %1863 = vrot.lane.b32.xlu0 %v3538_v7, %s2526_s7  ;;  %v3546_v9 = vmax.f32 %v1477_v32, %v1541_v54 }
 0x20a   : > { %v1478_v62 = vmax.f32 %v1058_v13, %v1060_v44  ;;  %v1542_v49 = vmax.f32 %v1411_v25, %v1413_v61  ;;  %v1674_v53 = vpop.permute.xlu1 %1673  ;;  %v1808_v63 = vpop.permute.xlu0 %1807 }
 0x20b   : > { %2058 = vst [vmem:[%s3504_s24 + $0x18] sm:$0xff] %v1994_v8  ;;  %v3550_v12 = vmax.f32 %v3151_v16, %v1674_v53  ;;  %v1931_v10 = vmax.f32 %v3160_v24, %v1808_v63 }
 0x20c   : > { %v3553_v11 = vmax.f32 %v1478_v62, %v1542_v49 }
 0x20d   : > { %v1995_v2 = vmax.f32 %v1931_v10, 0.0  ;;  %1865 = vrot.lane.b32.xlu1 %v3550_v12, %s2526_s7  ;;  %1731 = vrot.lane.b32.xlu0 %v3546_v9, %s2525_s17 }
 0x20e   : > { %v1810_v30 = vpop.permute.xlu1 %1809  ;;  %v1676_v61 = vpop.permute.xlu0 %1675 }
 0x20f   : > { %2059 = vst [vmem:[%s3504_s24 + $0x20] sm:$0xff] %v1995_v2  ;;  %v1932_v22 = vmax.f32 %v3173_v52, %v1810_v30  ;;  %v3562_v16 = vmax.f32 %v3170_v20, %v1676_v61 }
 0x211   : > { %v1996_v46 = vmax.f32 %v1932_v22, 0.0  ;;  %1733 = vrot.lane.b32.xlu1 %v3553_v11, %s2525_s17  ;;  %1867 = vrot.lane.b32.xlu0 %v3562_v16, %s2526_s7 }
 0x212   : > { %v1678_v24 = vpop.permute.xlu1 %1677  ;;  %v1812_v13 = vpop.permute.xlu0 %1811 }
 0x213   : > { %2060 = vst [vmem:[%s3504_s24 + $0x28] sm:$0xff] %v1996_v46  ;;  %v3570_v25 = vmax.f32 %v3177_v15, %v1678_v24  ;;  %v1933_v41 = vmax.f32 %v3186_v18, %v1812_v13  ;;  %v3924_v13 = vld [vmem:[#allocation6_spill] sm:$0xff] }
 0x215   : > { %v1997_v52 = vmax.f32 %v1933_v41, 0.0  ;;  %1869 = vrot.lane.b32.xlu1 %v3570_v25, %s2526_s7 }
 0x216   : > { %v1814_v20 = vpop.permute.xlu1 %1813  ;;  %v1680_v21 = vpop.permute.xlu0 %1679 }
 0x217   : > { %2061 = vst [vmem:[%s3504_s24 + $0x30] sm:$0xff] %v1997_v52  ;;  %v1934_v32 = vmax.f32 %v3199_v51, %v1814_v20  ;;  %v3578_v54 = vmax.f32 %v3196_v45, %v1680_v21  ;;  %v3925_v52 = vld [vmem:[#allocation5_spill] sm:$0xff] }
 0x219   : > { %v1998_v14 = vmax.f32 %v1934_v32, 0.0  ;;  %1871 = vrot.lane.b32.xlu0 %v3578_v54, %s2526_s7 }
 0x21a   : > { %v1682_v15 = vpop.permute.xlu1 %1681  ;;  %v1816_v18 = vpop.permute.xlu0 %1815 }
 0x21b   : > { %2062 = vst [vmem:[%s3504_s24 + $0x38] sm:$0xff] %v1998_v14  ;;  %v3584_v38 = vmax.f32 %v3203_v33, %v1682_v15  ;;  %v1935_v28 = vmax.f32 %v3212_v19, %v1816_v18 }
 0x21d   : > { %v1999_v44 = vmax.f32 %v1935_v28, 0.0  ;;  %1873 = vrot.lane.b32.xlu1 %v3584_v38, %s2526_s7 }
 0x21e   : > { %v1818_v51 = vpop.permute.xlu1 %1817  ;;  %v1684_v45 = vpop.permute.xlu0 %1683 }
 0x21f   : > { %2063 = vst [vmem:[%s3504_s24 + $0x40] sm:$0xff] %v1999_v44  ;;  %v1936_v8 = vmax.f32 %v3225_v58, %v1818_v51  ;;  %v3592_v62 = vmax.f32 %v3222_v6, %v1684_v45  ;;  %v3926_v44 = vld [vmem:[#allocation8_spill] sm:$0xff]  ;;  %v3927_v45 = vld [vmem:[#allocation7_spill] sm:$0xff] }
 0x221   : > { %v2000_v49 = vmax.f32 %v1936_v8, 0.0  ;;  %1875 = vrot.lane.b32.xlu0 %v3592_v62, %s2526_s7 }
 0x222   : > { %v1686_v33 = vpop.permute.xlu1 %1685  ;;  %v1820_v19 = vpop.permute.xlu0 %1819 }
 0x223   : > { %2064 = vst [vmem:[%s3504_s24 + $0x48] sm:$0xff] %v2000_v49  ;;  %v3598_v53 = vmax.f32 %v3229_v17, %v1686_v33  ;;  %v1937_v63 = vmax.f32 %v3238_v29, %v1820_v19 }
 0x225   : > { %v2001_v10 = vmax.f32 %v1937_v63, 0.0  ;;  %1877 = vrot.lane.b32.xlu1 %v3598_v53, %s2526_s7 }
 0x226   : > { %v1822_v58 = vpop.permute.xlu1 %1821  ;;  %v1688_v6 = vpop.permute.xlu0 %1687 }
 0x227   : > { %2065 = vst [vmem:[%s3504_s24 + $0x50] sm:$0xff] %v2001_v10  ;;  %v1938_v2 = vmax.f32 %v3251_v5, %v1822_v58  ;;  %v3606_v30 = vmax.f32 %v3248_v35, %v1688_v6  ;;  %v3928_v6 = vld [vmem:[#allocation10_spill] sm:$0xff] }
 0x229   : > { %v2002_v61 = vmax.f32 %v1938_v2, 0.0  ;;  %1879 = vrot.lane.b32.xlu0 %v3606_v30, %s2526_s7 }
 0x22a   : > { %v1690_v17 = vpop.permute.xlu1 %1689  ;;  %v1824_v29 = vpop.permute.xlu0 %1823 }
 0x22b   : > { %2066 = vst [vmem:[%s3504_s24 + $0x58] sm:$0xff] %v2002_v61  ;;  %v3612_v22 = vmax.f32 %v3255_v34, %v1690_v17  ;;  %v1939_v46 = vmax.f32 %v3264_v42, %v1824_v29  ;;  %v3929_v61 = vld [vmem:[#allocation9_spill] sm:$0xff] }
 0x22d   : > { %v2003_v24 = vmax.f32 %v1939_v46, 0.0  ;;  %1881 = vrot.lane.b32.xlu1 %v3612_v22, %s2526_s7 }
 0x22e   : > { %v1826_v5 = vpop.permute.xlu1 %1825  ;;  %v1692_v35 = vpop.permute.xlu0 %1691 }
 0x22f   : > { %2067 = vst [vmem:[%s3504_s24 + $0x60] sm:$0xff] %v2003_v24  ;;  %v1940_v41 = vmax.f32 %v3924_v13, %v1826_v5  ;;  %v3620_v20 = vmax.f32 %v3925_v52, %v1692_v35 }
 0x231   : > { %v2004_v21 = vmax.f32 %v1940_v41, 0.0  ;;  %1883 = vrot.lane.b32.xlu0 %v3620_v20, %s2526_s7  ;;  %v3930_v41 = vld [vmem:[#allocation12_spill] sm:$0xff] }
 0x232   : > { %v1694_v34 = vpop.permute.xlu1 %1693  ;;  %v1828_v42 = vpop.permute.xlu0 %1827 }
 0x233   : > { %2068 = vst [vmem:[%s3504_s24 + $0x68] sm:$0xff] %v2004_v21  ;;  %v3626_v32 = vmax.f32 %v3281_v50, %v1694_v34  ;;  %v1941_v14 = vmax.f32 %v3290_v23, %v1828_v42  ;;  %v3931_v21 = vld [vmem:[#allocation11_spill] sm:$0xff] }
 0x235   : > { %v2005_v15 = vmax.f32 %v1941_v14, 0.0  ;;  %1885 = vrot.lane.b32.xlu1 %v3626_v32, %s2526_s7 }
 0x236   : > { %v1830_v18 = vpop.permute.xlu1 %1829  ;;  %v1696_v28 = vpop.permute.xlu0 %1695 }
 0x237   : > { %2069 = vst [vmem:[%s3504_s24 + $0x70] sm:$0xff] %v2005_v15  ;;  %v1942_v51 = vmax.f32 %v3926_v44, %v1830_v18  ;;  %v3634_v8 = vmax.f32 %v3927_v45, %v1696_v28 }
 0x239   : > { %v2006_v49 = vmax.f32 %v1942_v51, 0.0  ;;  %1887 = vrot.lane.b32.xlu0 %v3634_v8, %s2526_s7  ;;  %v3932_v51 = vld [vmem:[#allocation14_spill] sm:$0xff] }
 0x23a   : > { %v1698_v50 = vpop.permute.xlu1 %1697  ;;  %v1832_v23 = vpop.permute.xlu0 %1831 }
 0x23b   : > { %2070 = vst [vmem:[%s3504_s24 + $0x78] sm:$0xff] %v2006_v49  ;;  %v3640_v33 = vmax.f32 %v3307_v48, %v1698_v50  ;;  %v1943_v19 = vmax.f32 %v3316_v40, %v1832_v23  ;;  %v3933_v49 = vld [vmem:[#allocation13_spill] sm:$0xff] }
 0x23d   : > { %v2007_v63 = vmax.f32 %v1943_v19, 0.0  ;;  %1889 = vrot.lane.b32.xlu1 %v3640_v33, %s2526_s7 }
 0x23e   : > { %v1834_v10 = vpop.permute.xlu1 %1833  ;;  %v1700_v58 = vpop.permute.xlu0 %1699 }
 0x23f   : > { %2071 = vst [vmem:[%s3504_s24 + $0x80] sm:$0xff] %v2007_v63  ;;  %v1944_v2 = vmax.f32 %v3928_v6, %v1834_v10  ;;  %v3648_v17 = vmax.f32 %v3929_v61, %v1700_v58 }
 0x241   : > { %v2008_v29 = vmax.f32 %v1944_v2, 0.0  ;;  %1891 = vrot.lane.b32.xlu0 %v3648_v17, %s2526_s7  ;;  %v3934_v2 = vld [vmem:[#allocation16_spill] sm:$0xff] }
 0x242   : > { %v1702_v48 = vpop.permute.xlu1 %1701  ;;  %v1836_v40 = vpop.permute.xlu0 %1835 }
 0x243   : > { %2072 = vst [vmem:[%s3504_s24 + $0x88] sm:$0xff] %v2008_v29  ;;  %v3654_v46 = vmax.f32 %v3333_v37, %v1702_v48  ;;  %v1945_v24 = vmax.f32 %v3342_v56, %v1836_v40  ;;  %v3935_v29 = vld [vmem:[#allocation15_spill] sm:$0xff] }
 0x245   : > { %v2009_v5 = vmax.f32 %v1945_v24, 0.0  ;;  %1893 = vrot.lane.b32.xlu1 %v3654_v46, %s2526_s7 }
 0x246   : > { %v1838_v35 = vpop.permute.xlu1 %1837  ;;  %v1704_v13 = vpop.permute.xlu0 %1703 }
 0x247   : > { %2073 = vst [vmem:[%s3504_s24 + $0x90] sm:$0xff] %v2009_v5  ;;  %v1946_v52 = vmax.f32 %v3930_v41, %v1838_v35  ;;  %v3662_v34 = vmax.f32 %v3931_v21, %v1704_v13 }
 0x249   : > { %v2010_v42 = vmax.f32 %v1946_v52, 0.0  ;;  %1895 = vrot.lane.b32.xlu0 %v3662_v34, %s2526_s7  ;;  %v3936_v52 = vld [vmem:[#allocation18_spill] sm:$0xff] }
 0x24a   : > { %v1706_v37 = vpop.permute.xlu1 %1705  ;;  %v1840_v56 = vpop.permute.xlu0 %1839 }
 0x24b   : > { %2074 = vst [vmem:[%s3504_s24 + $0x98] sm:$0xff] %v2010_v42  ;;  %v3668_v14 = vmax.f32 %v3359_v55, %v1706_v37  ;;  %v1947_v15 = vmax.f32 %v3368_v59, %v1840_v56  ;;  %v3937_v42 = vld [vmem:[#allocation17_spill] sm:$0xff] }
 0x24d   : > { %v2011_v18 = vmax.f32 %v1947_v15, 0.0  ;;  %1897 = vrot.lane.b32.xlu1 %v3668_v14, %s2526_s7 }
 0x24e   : > { %v1842_v28 = vpop.permute.xlu1 %1841  ;;  %v1708_v44 = vpop.permute.xlu0 %1707 }
 0x24f   : > { %2075 = vst [vmem:[%s3504_s24 + $0xa0] sm:$0xff] %v2011_v18  ;;  %v1948_v45 = vmax.f32 %v3932_v51, %v1842_v28  ;;  %v3676_v50 = vmax.f32 %v3933_v49, %v1708_v44 }
 0x251   : > { %v2012_v23 = vmax.f32 %v1948_v45, 0.0  ;;  %1899 = vrot.lane.b32.xlu0 %v3676_v50, %s2526_s7  ;;  %v3938_v45 = vld [vmem:[#allocation20_spill] sm:$0xff] }
 0x252   : > { %v1710_v55 = vpop.permute.xlu1 %1709  ;;  %v1844_v59 = vpop.permute.xlu0 %1843 }
 0x253   : > { %2076 = vst [vmem:[%s3504_s24 + $0xa8] sm:$0xff] %v2012_v23  ;;  %v3682_v19 = vmax.f32 %v3385_v27, %v1710_v55  ;;  %v1949_v63 = vmax.f32 %v3394_v39, %v1844_v59  ;;  %v3939_v23 = vld [vmem:[#allocation19_spill] sm:$0xff] }
 0x255   : > { %v2013_v10 = vmax.f32 %v1949_v63, 0.0  ;;  %1901 = vrot.lane.b32.xlu1 %v3682_v19, %s2526_s7 }
 0x256   : > { %v1846_v58 = vpop.permute.xlu1 %1845  ;;  %v1712_v6 = vpop.permute.xlu0 %1711 }
 0x257   : > { %2077 = vst [vmem:[%s3504_s24 + $0xb0] sm:$0xff] %v2013_v10  ;;  %v1950_v61 = vmax.f32 %v3934_v2, %v1846_v58  ;;  %v3690_v48 = vmax.f32 %v3935_v29, %v1712_v6  ;;  %v3940_v29 = vld [vmem:[#allocation21_spill] sm:$0xff] }
 0x259   : > { %v2014_v40 = vmax.f32 %v1950_v61, 0.0  ;;  %1903 = vrot.lane.b32.xlu0 %v3690_v48, %s2526_s7 }
 0x25a   : > { %v1714_v27 = vpop.permute.xlu1 %1713  ;;  %v1848_v39 = vpop.permute.xlu0 %1847 }
 0x25b   : > { %2078 = vst [vmem:[%s3504_s24 + $0xb8] sm:$0xff] %v2014_v40  ;;  %v3696_v24 = vmax.f32 %v3411_v47, %v1714_v27  ;;  %v1951_v5 = vmax.f32 %v3420_v0, %v1848_v39 }
 0x25d   : > { %v2015_v35 = vmax.f32 %v1951_v5, 0.0  ;;  %1905 = vrot.lane.b32.xlu1 %v3696_v24, %s2526_s7 }
 0x25e   : > { %v1850_v13 = vpop.permute.xlu1 %1849  ;;  %v1716_v41 = vpop.permute.xlu0 %1715 }
 0x25f   : > { %2079 = vst [vmem:[%s3504_s24 + $0xc0] sm:$0xff] %v2015_v35  ;;  %v1952_v21 = vmax.f32 %v3936_v52, %v1850_v13  ;;  %v3704_v37 = vmax.f32 %v3937_v42, %v1716_v41  ;;  %v3941_v52 = vld [vmem:[#allocation22_spill] sm:$0xff] }
 0x261   : > { %v2016_v56 = vmax.f32 %v1952_v21, 0.0  ;;  %1907 = vrot.lane.b32.xlu0 %v3704_v37, %s2526_s7 }
 0x262   : > { %v1718_v47 = vpop.permute.xlu1 %1717  ;;  %v1852_v0 = vpop.permute.xlu0 %1851 }
 0x263   : > { %2080 = vst [vmem:[%s3504_s24 + $0xc8] sm:$0xff] %v2016_v56  ;;  %v3710_v15 = vmax.f32 %v3437_v1, %v1718_v47  ;;  %v1953_v18 = vmax.f32 %v3446_v31, %v1852_v0 }
 0x265   : > { %v2017_v28 = vmax.f32 %v1953_v18, 0.0  ;;  %1909 = vrot.lane.b32.xlu1 %v3710_v15, %s2526_s7 }
 0x266   : > { %v1854_v44 = vpop.permute.xlu1 %1853  ;;  %v1720_v51 = vpop.permute.xlu0 %1719 }
 0x267   : > { %2081 = vst [vmem:[%s3504_s24 + $0xd0] sm:$0xff] %v2017_v28  ;;  %v1954_v49 = vmax.f32 %v3938_v45, %v1854_v44  ;;  %v3718_v55 = vmax.f32 %v3939_v23, %v1720_v51 }
 0x269   : > { %v2018_v59 = vmax.f32 %v1954_v49, 0.0  ;;  %1911 = vrot.lane.b32.xlu0 %v3718_v55, %s2526_s7 }
 0x26a   : > { %v1722_v1 = vpop.permute.xlu1 %1721  ;;  %v1856_v31 = vpop.permute.xlu0 %1855 }
 0x26b   : > { %2082 = vst [vmem:[%s3504_s24 + $0xd8] sm:$0xff] %v2018_v59  ;;  %v3724_v63 = vmax.f32 %v3463_v36, %v1722_v1  ;;  %v1955_v10 = vmax.f32 %v3472_v60, %v1856_v31 }
 0x26d   : > { %v2019_v58 = vmax.f32 %v1955_v10, 0.0  ;;  %1913 = vrot.lane.b32.xlu1 %v3724_v63, %s2526_s7 }
 0x26e   : > { %v1858_v6 = vpop.permute.xlu1 %1857  ;;  %v1724_v2 = vpop.permute.xlu0 %1723 }
 0x26f   : > { %2083 = vst [vmem:[%s3504_s24 + $0xe0] sm:$0xff] %v2019_v58  ;;  %v1956_v61 = vmax.f32 %v3488_v4, %v1858_v6  ;;  %v3732_v40 = vmax.f32 %v3940_v29, %v1724_v2 }
 0x271   : > { %v2020_v27 = vmax.f32 %v1956_v61, 0.0  ;;  %1915 = vrot.lane.b32.xlu0 %v3732_v40, %s2526_s7 }
 0x272   : > { %v1726_v36 = vpop.permute.xlu1 %1725 }
 0x273   : > { %2084 = vst [vmem:[%s3504_s24 + $0xe8] sm:$0xff] %v2020_v27  ;;  %v3738_v60 = vmax.f32 %v3492_v43, %v1726_v36  ;;  %v1860_v39 = vpop.permute.xlu0 %1859 }
 0x274   : > { %v1957_v5 = vmax.f32 %v3509_v57, %v1860_v39 }
 0x275   : > { %1917 = vrot.lane.b32.xlu1 %v3738_v60, %s2526_s7 }
 0x276   : > { %v2021_v4 = vmax.f32 %v1957_v5, 0.0 }
 0x277   : > { %v1862_v35 = vpop.permute.xlu1 %1861  ;;  %v1728_v13 = vpop.permute.xlu0 %1727 }
 0x278   : > { %2085 = vst [vmem:[%s3504_s24 + $0xf0] sm:$0xff] %v2021_v4  ;;  %v1958_v41 = vmax.f32 %v3520_v3, %v1862_v35  ;;  %v3746_v21 = vmax.f32 %v3941_v52, %v1728_v13 }
 0x27a   : > { %v2022_v42 = vmax.f32 %v1958_v41, 0.0  ;;  %1919 = vrot.lane.b32.xlu0 %v3746_v21, %s2526_s7 }
 0x27b   : > { %v1730_v43 = vpop.permute.xlu1 %1729  ;;  %v1864_v57 = vpop.permute.xlu0 %1863 }
 0x27c   : > { %2086 = vst [vmem:[%s3504_s24 + $0xf8] sm:$0xff] %v2022_v42  ;;  %v3752_v56 = vmax.f32 %v3525_v26, %v1730_v43  ;;  %v1959_v47 = vmax.f32 %v3538_v7, %v1864_v57 }
 0x27e   : > { %v2023_v0 = vmax.f32 %v1959_v47, 0.0  ;;  %1921 = vrot.lane.b32.xlu1 %v3752_v56, %s2526_s7 }
 0x27f   : > { %v1866_v3 = vpop.permute.xlu1 %1865  ;;  %v1732_v18 = vpop.permute.xlu0 %1731 }
 0x280   : > { %2087 = vst [vmem:[%s3504_s24 + $0x100] sm:$0xff] %v2023_v0  ;;  %v1960_v28 = vmax.f32 %v3550_v12, %v1866_v3  ;;  %v3760_v44 = vmax.f32 %v3546_v9, %v1732_v18 }
 0x282   : > { %v2024_v51 = vmax.f32 %v1960_v28, 0.0  ;;  %1923 = vrot.lane.b32.xlu0 %v3760_v44, %s2526_s7 }
 0x283   : > { %v1734_v26 = vpop.permute.xlu1 %1733  ;;  %v1868_v7 = vpop.permute.xlu0 %1867 }
 0x284   : > { %2088 = vst [vmem:[%s3504_s24 + $0x108] sm:$0xff] %v2024_v51  ;;  %v3766_v45 = vmax.f32 %v3553_v11, %v1734_v26  ;;  %v1961_v49 = vmax.f32 %v3562_v16, %v1868_v7 }
 0x286   : > { %v2025_v23 = vmax.f32 %v1961_v49, 0.0  ;;  %1925 = vrot.lane.b32.xlu1 %v3766_v45, %s2526_s7 }
 0x287   : > { %v1870_v9 = vpop.permute.xlu1 %1869 }
 0x288   : > { %2089 = vst [vmem:[%s3504_s24 + $0x110] sm:$0xff] %v2025_v23  ;;  %v1962_v12 = vmax.f32 %v3570_v25, %v1870_v9 }
 0x28a   : > { %v2026_v59 = vmax.f32 %v1962_v12, 0.0 }
 0x28b   : > { %v1872_v1 = vpop.permute.xlu0 %1871 }
 0x28c   : > { %2090 = vst [vmem:[%s3504_s24 + $0x118] sm:$0xff] %v2026_v59  ;;  %v1963_v31 = vmax.f32 %v3578_v54, %v1872_v1 }
 0x28e   : > { %v2027_v11 = vmax.f32 %v1963_v31, 0.0 }
 0x28f   : > { %v1874_v10 = vpop.permute.xlu1 %1873 }
 0x290   : > { %2091 = vst [vmem:[%s3504_s24 + $0x120] sm:$0xff] %v2027_v11  ;;  %v1964_v16 = vmax.f32 %v3584_v38, %v1874_v10 }
 0x292   : > { %v2028_v58 = vmax.f32 %v1964_v16, 0.0 }
 0x293   : > { %v1876_v6 = vpop.permute.xlu0 %1875 }
 0x294   : > { %2092 = vst [vmem:[%s3504_s24 + $0x128] sm:$0xff] %v2028_v58  ;;  %v1965_v2 = vmax.f32 %v3592_v62, %v1876_v6 }
 0x296   : > { %v2029_v61 = vmax.f32 %v1965_v2, 0.0 }
 0x297   : > { %v1878_v25 = vpop.permute.xlu1 %1877 }
 0x298   : > { %2093 = vst [vmem:[%s3504_s24 + $0x130] sm:$0xff] %v2029_v61  ;;  %v1966_v29 = vmax.f32 %v3598_v53, %v1878_v25 }
 0x29a   : > { %v2030_v27 = vmax.f32 %v1966_v29, 0.0 }
 0x29b   : > { %v1880_v54 = vpop.permute.xlu0 %1879 }
 0x29c   : > { %2094 = vst [vmem:[%s3504_s24 + $0x138] sm:$0xff] %v2030_v27  ;;  %v1967_v36 = vmax.f32 %v3606_v30, %v1880_v54 }
 0x29e   : > { %v2031_v39 = vmax.f32 %v1967_v36, 0.0 }
 0x29f   : > { %v1882_v38 = vpop.permute.xlu1 %1881 }
 0x2a0   : > { %2095 = vst [vmem:[%s3504_s24 + $0x140] sm:$0xff] %v2031_v39  ;;  %v1968_v5 = vmax.f32 %v3612_v22, %v1882_v38 }
 0x2a2   : > { %v2032_v4 = vmax.f32 %v1968_v5, 0.0 }
 0x2a3   : > { %v1884_v62 = vpop.permute.xlu0 %1883 }
 0x2a4   : > { %2096 = vst [vmem:[%s3504_s24 + $0x148] sm:$0xff] %v2032_v4  ;;  %v1969_v35 = vmax.f32 %v3620_v20, %v1884_v62 }
 0x2a6   : > { %v2033_v13 = vmax.f32 %v1969_v35, 0.0 }
 0x2a7   : > { %v1886_v53 = vpop.permute.xlu1 %1885 }
 0x2a8   : > { %2097 = vst [vmem:[%s3504_s24 + $0x150] sm:$0xff] %v2033_v13  ;;  %v1970_v41 = vmax.f32 %v3626_v32, %v1886_v53 }
 0x2aa   : > { %v2034_v52 = vmax.f32 %v1970_v41, 0.0 }
 0x2ab   : > { %v1888_v30 = vpop.permute.xlu0 %1887 }
 0x2ac   : > { %2098 = vst [vmem:[%s3504_s24 + $0x158] sm:$0xff] %v2034_v52  ;;  %v1971_v42 = vmax.f32 %v3634_v8, %v1888_v30 }
 0x2ae   : > { %v2035_v43 = vmax.f32 %v1971_v42, 0.0 }
 0x2af   : > { %v1890_v22 = vpop.permute.xlu1 %1889 }
 0x2b0   : > { %2099 = vst [vmem:[%s3504_s24 + $0x160] sm:$0xff] %v2035_v43  ;;  %v1972_v57 = vmax.f32 %v3640_v33, %v1890_v22 }
 0x2b2   : > { %v2036_v47 = vmax.f32 %v1972_v57, 0.0 }
 0x2b3   : > { %v1892_v20 = vpop.permute.xlu0 %1891 }
 0x2b4   : > { %2100 = vst [vmem:[%s3504_s24 + $0x168] sm:$0xff] %v2036_v47  ;;  %v1973_v0 = vmax.f32 %v3648_v17, %v1892_v20 }
 0x2b6   : > { %v2037_v3 = vmax.f32 %v1973_v0, 0.0 }
 0x2b7   : > { %v1894_v32 = vpop.permute.xlu1 %1893 }
 0x2b8   : > { %2101 = vst [vmem:[%s3504_s24 + $0x170] sm:$0xff] %v2037_v3  ;;  %v1974_v18 = vmax.f32 %v3654_v46, %v1894_v32 }
 0x2ba   : > { %v2038_v28 = vmax.f32 %v1974_v18, 0.0 }
 0x2bb   : > { %v1896_v8 = vpop.permute.xlu0 %1895 }
 0x2bc   : > { %2102 = vst [vmem:[%s3504_s24 + $0x178] sm:$0xff] %v2038_v28  ;;  %v1975_v51 = vmax.f32 %v3662_v34, %v1896_v8 }
 0x2be   : > { %v2039_v26 = vmax.f32 %v1975_v51, 0.0 }
 0x2bf   : > { %v1898_v33 = vpop.permute.xlu1 %1897 }
 0x2c0   : > { %2103 = vst [vmem:[%s3504_s24 + $0x180] sm:$0xff] %v2039_v26  ;;  %v1976_v7 = vmax.f32 %v3668_v14, %v1898_v33 }
 0x2c2   : > { %v2040_v49 = vmax.f32 %v1976_v7, 0.0 }
 0x2c3   : > { %v1900_v17 = vpop.permute.xlu0 %1899 }
 0x2c4   : > { %2104 = vst [vmem:[%s3504_s24 + $0x188] sm:$0xff] %v2040_v49  ;;  %v1977_v23 = vmax.f32 %v3676_v50, %v1900_v17 }
 0x2c6   : > { %v2041_v9 = vmax.f32 %v1977_v23, 0.0 }
 0x2c7   : > { %v1902_v46 = vpop.permute.xlu1 %1901 }
 0x2c8   : > { %2105 = vst [vmem:[%s3504_s24 + $0x190] sm:$0xff] %v2041_v9  ;;  %v1978_v12 = vmax.f32 %v3682_v19, %v1902_v46 }
 0x2ca   : > { %v2042_v59 = vmax.f32 %v1978_v12, 0.0 }
 0x2cb   : > { %v1904_v34 = vpop.permute.xlu0 %1903 }
 0x2cc   : > { %2106 = vst [vmem:[%s3504_s24 + $0x198] sm:$0xff] %v2042_v59  ;;  %v1979_v1 = vmax.f32 %v3690_v48, %v1904_v34 }
 0x2ce   : > { %v2043_v31 = vmax.f32 %v1979_v1, 0.0 }
 0x2cf   : > { %v1906_v14 = vpop.permute.xlu1 %1905 }
 0x2d0   : > { %2107 = vst [vmem:[%s3504_s24 + $0x1a0] sm:$0xff] %v2043_v31  ;;  %v1980_v11 = vmax.f32 %v3696_v24, %v1906_v14 }
 0x2d2   : > { %v2044_v10 = vmax.f32 %v1980_v11, 0.0 }
 0x2d3   : > { %v1908_v50 = vpop.permute.xlu0 %1907 }
 0x2d4   : > { %2108 = vst [vmem:[%s3504_s24 + $0x1a8] sm:$0xff] %v2044_v10  ;;  %v1981_v16 = vmax.f32 %v3704_v37, %v1908_v50 }
 0x2d6   : > { %v2045_v58 = vmax.f32 %v1981_v16, 0.0 }
 0x2d7   : > { %v1910_v19 = vpop.permute.xlu1 %1909 }
 0x2d8   : > { %2109 = vst [vmem:[%s3504_s24 + $0x1b0] sm:$0xff] %v2045_v58  ;;  %v1982_v6 = vmax.f32 %v3710_v15, %v1910_v19 }
 0x2da   : > { %v2046_v2 = vmax.f32 %v1982_v6, 0.0 }
 0x2db   : > { %v1912_v48 = vpop.permute.xlu0 %1911 }
 0x2dc   : > { %2110 = vst [vmem:[%s3504_s24 + $0x1b8] sm:$0xff] %v2046_v2  ;;  %v1983_v61 = vmax.f32 %v3718_v55, %v1912_v48 }
 0x2de   : > { %v2047_v25 = vmax.f32 %v1983_v61, 0.0 }
 0x2df   : > { %v1914_v24 = vpop.permute.xlu1 %1913 }
 0x2e0   : > { %2111 = vst [vmem:[%s3504_s24 + $0x1c0] sm:$0xff] %v2047_v25  ;;  %v1984_v29 = vmax.f32 %v3724_v63, %v1914_v24 }
 0x2e2   : > { %v2048_v27 = vmax.f32 %v1984_v29, 0.0 }
 0x2e3   : > { %v1916_v37 = vpop.permute.xlu0 %1915 }
 0x2e4   : > { %2112 = vst [vmem:[%s3504_s24 + $0x1c8] sm:$0xff] %v2048_v27  ;;  %v1985_v54 = vmax.f32 %v3732_v40, %v1916_v37 }
 0x2e6   : > { %v2049_v36 = vmax.f32 %v1985_v54, 0.0 }
 0x2e7   : > { %v1918_v15 = vpop.permute.xlu1 %1917 }
 0x2e8   : > { %2113 = vst [vmem:[%s3504_s24 + $0x1d0] sm:$0xff] %v2049_v36  ;;  %v1986_v39 = vmax.f32 %v3738_v60, %v1918_v15 }
 0x2ea   : > { %v2050_v55 = vmax.f32 %v1986_v39, 0.0 }
 0x2ec   : > { %2114 = vst [vmem:[%s3504_s24 + $0x1d8] sm:$0xff] %v2050_v55  ;;  %v1920_v38 = vpop.permute.xlu0 %1919 }
 0x2ed   : > { %v1987_v5 = vmax.f32 %v3746_v21, %v1920_v38 }
 0x2ef   : > { %v2051_v63 = vmax.f32 %v1987_v5, 0.0 }
 0x2f0   : > { %v1922_v4 = vpop.permute.xlu1 %1921 }
 0x2f1   : > { %2115 = vst [vmem:[%s3504_s24 + $0x1e0] sm:$0xff] %v2051_v63  ;;  %v1988_v40 = vmax.f32 %v3752_v56, %v1922_v4 }
 0x2f3   : > { %v2052_v62 = vmax.f32 %v1988_v40, 0.0 }
 0x2f4   : > { %v1924_v35 = vpop.permute.xlu0 %1923 }
 0x2f5   : > { %2116 = vst [vmem:[%s3504_s24 + $0x1e8] sm:$0xff] %v2052_v62  ;;  %v1989_v13 = vmax.f32 %v3760_v44, %v1924_v35 }
 0x2f7   : > { %v2053_v60 = vmax.f32 %v1989_v13, 0.0 }
 0x2f8   : > { %v1926_v53 = vpop.permute.xlu1 %1925 }
 0x2f9   : > { %2117 = vst [vmem:[%s3504_s24 + $0x1f0] sm:$0xff] %v2053_v60  ;;  %v1990_v21 = vmax.f32 %v3766_v45, %v1926_v53 }
 0x2fb   : > { %v2054_v56 = vmax.f32 %v1990_v21, 0.0 }
 0x2fd   : > { %2118 = vst [vmem:[%s3504_s24 + $0x1f8] sm:$0xff] %v2054_v56 }
 0x2fe   : > { %2473 = shalt.err (!%p2470_p3)
}
 0x2ff   : > { %s2474_s8 = scalar_lea.hbm %s3834_s29, 8192  ;;  %s2478_s11 = scalar_lea.hbm %s3885_s3, 24576 }
 0x300   : > { %p2475_p4 = scmp.ne.s32.totalorder %s3834_s29, %s2474_s8  ;;  %p2479_p9 = scmp.lt.u32.totalorder %s3834_s29, %s3885_s3 }
 0x301   : > { %p2480_p10 = scmp.lt.u32.totalorder %s2478_s11, %s2474_s8  ;;  %p2482_p12 = scmp.lt.u32.totalorder %s2474_s8, %s3834_s29 }
 0x302   : > { %p2476_p7 = pnand %p2475_p4, %p2588_p5 }
 0x303   : > { %p2481_p11 = por %p2480_p10, %p2479_p9 }
 0x304   : > { %p2477_p8 = pneg %p2476_p7 }
 0x305   : > { %p2483_p13 = por %p2482_p12, %p2481_p11 }
 0x307   : > { %p2484_p0 = pnand %p2483_p13, %p2477_p8 }
 0x309   : > { %2487 = shalt.err (!%p2484_p0)
}
 0x30a   : > { %s2528_s19 = smov 128   ;;  %s2529_s20 = smov 8  }
 0x30b   : > { %2338 = dma.vmem_to_hbm [thread:$0]  (%p2588_p5), %s3836_s26, 8192, %s3834_s29, %s3841_s4, %s2528_s19, %s2528_s19, %s2529_s20  }
 0x30c PF: > { %p2344_p1 = scmp.ge.s32.totalorder %s2522_s15, 2  ;;  %s2148_s24 = sand.u32 1, %s2510_s12  }
 0x30d   : > { %s2149_s25 = scalar_lea.sflag [#allocation3], %s2148_s24 }
 0x30e   : > { %p2341_p2 = pnand %p2344_p1, %p2592_p6 }
 0x310   : > { %2505 = dma.done.wait (!%p2341_p2), %s2149_s25, 8192  }
 0x311   : > { %2507 = vsyncadd (!%p2341_p2), %s2149_s25, 4294959104  ;;  %p13_p3 = scmp.ge.s32.totalorder %s2575_s18, 5   ;;  %s3942_s12 = smov %s2514_s13 }
 0x312   : > { %s3943_s13 = smov %s2518_s14  ;;  %s3944_s14 = smov %s2586_s21 }
 0x313   : > { %s3945_s15 = smov %s2575_s18  ;;  %15 = sbr.rel (!%p13_p3) target bundleno = 3 (0x3), region = 67 }
 0x31a   :  { %2154 = vsyncpa [#allocation3], 1 }
 0x31b   :  { %2156 = vsyncpa [#allocation3 + $0x1], 1 }

</bundles_post_ra>
